<compile_context>
chip_gen: v5e
topology: v5e:2x2
jax: 0.10.0
libtpu: 0.0.40
codegen_flags: <defaults>
</compile_context>

<pallas_src>
import functools

import jax
import jax.numpy as jnp
import numpy as np
from jax.experimental import pallas as pl
from jax.experimental.pallas import tpu as pltpu

# ---- module constants (from conv/sentence.py) -------------------------------
EMBED_DIM = 400
FILTER_WIDTH = 5
NKERNELS = 100
NUM_INPUT_CHANNELS = 1
PAD = (FILTER_WIDTH - 1) // 2          # = 2
E1 = EMBED_DIM + 1                     # conv kernel width = 401

# ---- TPU-friendly padded sizes ----------------------------------------------
K_PAD = 128                            # 100 -> 128 (one lane tile)
N_WIDE = FILTER_WIDTH * K_PAD          # 640 : tap-concatenated output channels
TAP_GROUPS = ((0, 1), (2, 3), (4,))    # tap pairs -> N=256 matmuls (N=128 last)


# ---- Pallas kernel -----------------------------------------------------------
def _sentence_kernel(tb, s, q_ref, a_ref, w_ref, b_ref, qo_ref, ao_ref):
    """One grid step == tb q-sequences + tb a-sequences.

    q_ref, a_ref: (tb, s, E1) f32   original (unpadded) activations
    w_ref:        (E1, 5*K_PAD) bf16 tap-concatenated conv weights (resident)
    b_ref:        (1, K_PAD) f32
    qo_ref, ao_ref: (1, tb, K_PAD) f32 per-step output blocks
    """
    m = tb * s
    # Position of each row inside its sequence (sublane iota), shared by q/a.
    pos = jax.lax.broadcasted_iota(jnp.int32, (tb, s, K_PAD), 1)

    def branch(x_ref, o_ref):
        # f32 block -> flat (m, E1) bf16.  Cast on the VPU; the reshape is a
        # free relabel when s % 8 == 0 (demo: s=8).
        x = x_ref[...].reshape(m, E1).astype(jnp.bfloat16)

        acc = None
        for group in TAP_GROUPS:
            c0 = group[0] * K_PAD
            c1 = (group[-1] + 1) * K_PAD
            # One N=256 (or 128) MXU matmul per tap group, f32 accumulation.
            yg = jnp.dot(x, w_ref[:, c0:c1],
                         preferred_element_type=jnp.float32)        # (m, |g|*128)
            for idx, dt in enumerate(group):
                y = yg[:, idx * K_PAD:(idx + 1) * K_PAD]             # lane-aligned
                # conv output at row r needs y[r + dt - PAD]  ->  roll by PAD-dt
                # on the otherwise-idle XLU (no relayout copies).
                shift = (PAD - dt) % m
                if shift:
                    y = pltpu.roll(y, shift=shift, axis=0)
                y3 = y.reshape(tb, s, K_PAD)
                if dt == PAD:
                    contrib = y3                                     # always valid
                else:
                    # In-kernel conv zero-padding: tap dt at position j reads
                    # input row j + dt - PAD; contributes 0 outside [0, s).
                    # This also kills cross-sequence / roll-wrap contamination.
                    valid = (pos >= PAD - dt) & (pos < s + PAD - dt)
                    contrib = jnp.where(valid, y3, 0.0)
                acc = contrib if acc is None else acc + contrib

        # Single vectorized per-sequence max, then bias + tanh on the reduced
        # (tb, 128) tile only (tanh monotone, bias constant per channel).
        feats = jnp.max(acc, axis=1)                                 # (tb, K_PAD)
        o_ref[...] = jnp.tanh(feats + b_ref[...])[None]              # (1, tb, K_PAD)

    branch(q_ref, qo_ref)
    branch(a_ref, ao_ref)


# ---- wrapper -----------------------------------------------------------------
def _pick_tb(B, S, max_tb, min_steps, vmem_budget_bytes):
    """Sequences per grid step: as large as VMEM allows, but keep >= min_steps
    grid steps (v7x two-core sharding + pipelining) and tb | B."""
    # Rough per-sequence VMEM: q+a double-buffered f32 blocks, bf16 copy,
    # and ~8 (S,128) f32 temporaries (acc / tap results / iota).
    per_seq = (2 * 2 * S * E1 * 4) + (S * E1 * 2) + (8 * S * K_PAD * 4)
    cap = max(1, vmem_budget_bytes // per_seq)
    tb = int(max(1, min(max_tb, cap, -(-B // min_steps))))
    while B % tb:
        tb -= 1
    return tb


def sentence_forward(q_input, a_input, w_cat, bias, *,
                     max_tb=64, min_steps=4, vmem_budget_bytes=20 << 20):
    """Mirrors Sentence.forward: returns (q_feats, a_feats), each (B, NKERNELS).

    w_cat / bias come from pack_conv_params (repacking hoisted out of the
    per-call path)."""
    B, S, e1 = q_input.shape
    assert e1 == E1 and a_input.shape == (B, S, E1)

    tb = _pick_tb(B, S, max_tb, min_steps, vmem_budget_bytes)
    nblk = B // tb
    kernel = functools.partial(_sentence_kernel, tb, S)

    q_out, a_out = pl.pallas_call(
        kernel,
        out_shape=(
            jax.ShapeDtypeStruct((nblk, tb, K_PAD), jnp.float32),
            jax.ShapeDtypeStruct((nblk, tb, K_PAD), jnp.float32),
        ),
        grid_spec=pltpu.PrefetchScalarGridSpec(
            num_scalar_prefetch=0,
            grid=(nblk,),
            in_specs=[
                pl.BlockSpec((tb, S, E1), lambda i: (i, 0, 0)),      # q (f32, raw)
                pl.BlockSpec((tb, S, E1), lambda i: (i, 0, 0)),      # a (f32, raw)
                pl.BlockSpec((E1, N_WIDE), lambda i: (0, 0)),        # resident weight
                pl.BlockSpec((1, K_PAD), lambda i: (0, 0)),          # resident bias
            ],
            out_specs=(
                pl.BlockSpec((1, tb, K_PAD), lambda i: (i, 0, 0)),   # q feats
                pl.BlockSpec((1, tb, K_PAD), lambda i: (i, 0, 0)),   # a feats
            ),
        ),
        compiler_params=pltpu.CompilerParams(
            dimension_semantics=("parallel",),
            vmem_limit_bytes=48 << 20,
        ),
    )(q_input, a_input, w_cat, bias)

    q_feats = q_out.reshape(B, K_PAD)[:, :NKERNELS]
    a_feats = a_out.reshape(B, K_PAD)[:, :NKERNELS]
    return q_feats, a_feats


# ---- one-time parameter repacking (hoisted out of the per-call path) ---------
def pack_conv_params(params):
    """PyTorch OIHW (K,1,F,E1) -> (E1, 5*128) bf16 tap-concatenated weight +
    (1, 128) f32 bias."""
    w = jnp.transpose(params["conv_w"][:, 0, :, :], (1, 2, 0))        # (F, E1, K)
    w_pad = jnp.zeros((FILTER_WIDTH, E1, K_PAD), jnp.float32
                      ).at[..., :NKERNELS].set(w)
    w_cat = jnp.transpose(w_pad, (1, 0, 2)).reshape(E1, N_WIDE)       # (E1, 640)
    w_cat = w_cat.astype(jnp.bfloat16)
    bias = jnp.zeros((1, K_PAD), jnp.float32).at[0, :NKERNELS].set(params["conv_b"])
    return w_cat, bias


# ---- deterministic parameter init (synthetic, no checkpoint) -----------------
def _xavier_uniform(key, shape, fan_in, fan_out):
    bound = float(np.sqrt(6.0 / (fan_in + fan_out)))
    return jax.random.uniform(key, shape, jnp.float32, -bound, bound)


def init_params(key):
    k_w, k_b, k_att = jax.random.split(key, 3)
    recept = NUM_INPUT_CHANNELS * FILTER_WIDTH * E1
    conv_w = _xavier_uniform(k_w, (NKERNELS, NUM_INPUT_CHANNELS, FILTER_WIDTH, E1),
                             fan_in=recept, fan_out=NKERNELS * FILTER_WIDTH * E1)
    bb = 1.0 / float(np.sqrt(recept))
    conv_b = jax.random.uniform(k_b, (NKERNELS,), jnp.float32, -bb, bb)
    # atten_mat is a parameter of the module but is NOT used in forward()
    atten_mat = _xavier_uniform(k_att, (NKERNELS, NKERNELS),
                                fan_in=NKERNELS, fan_out=NKERNELS)
    return {"conv_w": conv_w, "conv_b": conv_b, "atten_mat": atten_mat}


# ---- pure-JAX reference (NCHW, exact PyTorch semantics) ----------------------
def _ref_branch(x, conv_w, conv_b):
    xin = x[:, None, :, :]                                   # (B,1,S,E1)
    y = jax.lax.conv_general_dilated(
        xin, conv_w, window_strides=(1, 1),
        padding=((PAD, PAD), (0, 0)),
        dimension_numbers=("NCHW", "OIHW", "NCHW"),
        precision=jax.lax.Precision.HIGHEST)                 # (B,K,S,1)
    y = y + conv_b[None, :, None, None]
    y = jnp.tanh(y[..., 0])                                  # (B,K,S)
    return jnp.max(y, axis=2)                                # (B,K)


if __name__ == "__main__":
    key = jax.random.PRNGKey(0)
    k_params, k_q, k_a = jax.random.split(key, 3)
    params = init_params(k_params)
    w_cat, bias = pack_conv_params(params)                   # packed once

    B, S = 2, 8                                              # small batch / seq
    q_input = jax.random.normal(k_q, (B, S, E1), jnp.float32)
    a_input = jax.random.normal(k_a, (B, S, E1), jnp.float32)

    fwd = jax.jit(lambda q, a, w, b: sentence_forward(q, a, w, b))
    q_feats, a_feats = fwd(q_input, a_input, w_cat, bias)
    jax.block_until_ready((q_feats, a_feats))

    assert q_feats.shape == (B, NKERNELS) and a_feats.shape == (B, NKERNELS)

    q_ref = _ref_branch(q_input, params["conv_w"], params["conv_b"])
    a_ref = _ref_branch(a_input, params["conv_w"], params["conv_b"])
    np.testing.assert_allclose(np.asarray(q_feats), np.asarray(q_ref),
                               rtol=5e-3, atol=5e-3)
    np.testing.assert_allclose(np.asarray(a_feats), np.asarray(a_ref),
                               rtol=5e-3, atol=5e-3)

    print("KERNEL_OK")
</pallas_src>

<mosaic_0001>
module attributes {stable_mosaic.version = 11 : i64} {
  func.func @_sentence_kernel(%arg0: i32, %arg1: memref<1x8x401xf32, #tpu.memory_space<vmem>>, %arg2: memref<1x8x401xf32, #tpu.memory_space<vmem>>, %arg3: memref<401x640xbf16, #tpu.memory_space<vmem>>, %arg4: memref<1x128xf32, #tpu.memory_space<vmem>>, %arg5: memref<1x1x128xf32, #tpu.memory_space<vmem>>, %arg6: memref<1x1x128xf32, #tpu.memory_space<vmem>>) attributes {dimension_semantics = [#tpu.dimension_semantics<parallel>], iteration_bounds = array<i64: 2>, scalar_prefetch = 0 : i64, scratch_operands = 0 : i64, tpu.core_type = #tpu.core_type<tc>, window_params = [{transform_indices = @transform_0, window_bounds = array<i64: 1, 8, 401>}, {transform_indices = @transform_1, window_bounds = array<i64: 1, 8, 401>}, {pipeline_mode = #tpu.pipeline_mode<synchronous>, transform_indices = @transform_2, window_bounds = array<i64: 401, 640>}, {pipeline_mode = #tpu.pipeline_mode<synchronous>, transform_indices = @transform_3, window_bounds = array<i64: 1, 128>}, {transform_indices = @transform_4, window_bounds = array<i64: 1, 1, 128>}, {transform_indices = @transform_5, window_bounds = array<i64: 1, 1, 128>}]} {
    %0 = tpu.iota {dimensions = array<i32: 1>} : vector<1x8x128xi32>
    %c0 = arith.constant 0 : index
    %c0_0 = arith.constant 0 : index
    %c0_1 = arith.constant 0 : index
    %1 = vector.load %arg1[%c0, %c0_0, %c0_1] : memref<1x8x401xf32, #tpu.memory_space<vmem>>, vector<1x8x401xf32>
    %2 = vector.shape_cast %1 : vector<1x8x401xf32> to vector<8x401xf32>
    %3 = arith.truncf %2 : vector<8x401xf32> to vector<8x401xbf16>
    %c0_2 = arith.constant 0 : index
    %c0_3 = arith.constant 0 : index
    %4 = vector.load %arg3[%c0_2, %c0_3] : memref<401x640xbf16, #tpu.memory_space<vmem>>, vector<401x256xbf16>
    %cst = arith.constant dense<0.000000e+00> : vector<8x256xf32>
    %5 = tpu.matmul %3, %4, %cst {dimension_numbers = #tpu.dot_dimension_numbers<[1], [0], [0], [1], [0, 0, 1, 1], [], []>} : vector<8x401xbf16>, vector<401x256xbf16>, vector<8x256xf32> -> vector<8x256xf32>
    %6 = vector.extract_strided_slice %5 {offsets = [0, 0], sizes = [8, 128], strides = [1, 1]} : vector<8x256xf32> to vector<8x128xf32>
    %c2_i32 = arith.constant 2 : i32
    %7 = tpu.dynamic_rotate %6 by %c2_i32 dim 0 : vector<8x128xf32>, i32 -> vector<8x128xf32>
    %8 = vector.shape_cast %7 : vector<8x128xf32> to vector<1x8x128xf32>
    %c2_i32_4 = arith.constant 2 : i32
    %9 = vector.broadcast %c2_i32_4 : i32 to vector<1x8x128xi32>
    %10 = arith.cmpi sge, %0, %9 : vector<1x8x128xi32>
    %c10_i32 = arith.constant 10 : i32
    %11 = vector.broadcast %c10_i32 : i32 to vector<1x8x128xi32>
    %12 = arith.cmpi slt, %0, %11 : vector<1x8x128xi32>
    %13 = arith.andi %10, %12 : vector<1x8x128xi1>
    %cst_5 = arith.constant 0.000000e+00 : f32
    %14 = vector.broadcast %cst_5 : f32 to vector<1x8x128xf32>
    %15 = arith.select %13, %8, %14 : vector<1x8x128xi1>, vector<1x8x128xf32>
    %16 = vector.extract_strided_slice %5 {offsets = [0, 128], sizes = [8, 128], strides = [1, 1]} : vector<8x256xf32> to vector<8x128xf32>
    %c1_i32 = arith.constant 1 : i32
    %17 = tpu.dynamic_rotate %16 by %c1_i32 dim 0 : vector<8x128xf32>, i32 -> vector<8x128xf32>
    %18 = vector.shape_cast %17 : vector<8x128xf32> to vector<1x8x128xf32>
    %c1_i32_6 = arith.constant 1 : i32
    %19 = vector.broadcast %c1_i32_6 : i32 to vector<1x8x128xi32>
    %20 = arith.cmpi sge, %0, %19 : vector<1x8x128xi32>
    %c9_i32 = arith.constant 9 : i32
    %21 = vector.broadcast %c9_i32 : i32 to vector<1x8x128xi32>
    %22 = arith.cmpi slt, %0, %21 : vector<1x8x128xi32>
    %23 = arith.andi %20, %22 : vector<1x8x128xi1>
    %cst_7 = arith.constant 0.000000e+00 : f32
    %24 = vector.broadcast %cst_7 : f32 to vector<1x8x128xf32>
    %25 = arith.select %23, %18, %24 : vector<1x8x128xi1>, vector<1x8x128xf32>
    %26 = arith.addf %15, %25 : vector<1x8x128xf32>
    %c0_8 = arith.constant 0 : index
    %c256 = arith.constant 256 : index
    %27 = vector.load %arg3[%c0_8, %c256] : memref<401x640xbf16, #tpu.memory_space<vmem>>, vector<401x256xbf16>
    %cst_9 = arith.constant dense<0.000000e+00> : vector<8x256xf32>
    %28 = tpu.matmul %3, %27, %cst_9 {dimension_numbers = #tpu.dot_dimension_numbers<[1], [0], [0], [1], [0, 0, 1, 1], [], []>} : vector<8x401xbf16>, vector<401x256xbf16>, vector<8x256xf32> -> vector<8x256xf32>
    %29 = vector.extract_strided_slice %28 {offsets = [0, 0], sizes = [8, 128], strides = [1, 1]} : vector<8x256xf32> to vector<8x128xf32>
    %30 = vector.shape_cast %29 : vector<8x128xf32> to vector<1x8x128xf32>
    %31 = arith.addf %26, %30 : vector<1x8x128xf32>
    %32 = vector.extract_strided_slice %28 {offsets = [0, 128], sizes = [8, 128], strides = [1, 1]} : vector<8x256xf32> to vector<8x128xf32>
    %c7_i32 = arith.constant 7 : i32
    %33 = tpu.dynamic_rotate %32 by %c7_i32 dim 0 : vector<8x128xf32>, i32 -> vector<8x128xf32>
    %34 = vector.shape_cast %33 : vector<8x128xf32> to vector<1x8x128xf32>
    %c-1_i32 = arith.constant -1 : i32
    %35 = vector.broadcast %c-1_i32 : i32 to vector<1x8x128xi32>
    %36 = arith.cmpi sge, %0, %35 : vector<1x8x128xi32>
    %c7_i32_10 = arith.constant 7 : i32
    %37 = vector.broadcast %c7_i32_10 : i32 to vector<1x8x128xi32>
    %38 = arith.cmpi slt, %0, %37 : vector<1x8x128xi32>
    %39 = arith.andi %36, %38 : vector<1x8x128xi1>
    %cst_11 = arith.constant 0.000000e+00 : f32
    %40 = vector.broadcast %cst_11 : f32 to vector<1x8x128xf32>
    %41 = arith.select %39, %34, %40 : vector<1x8x128xi1>, vector<1x8x128xf32>
    %42 = arith.addf %31, %41 : vector<1x8x128xf32>
    %c0_12 = arith.constant 0 : index
    %c512 = arith.constant 512 : index
    %43 = vector.load %arg3[%c0_12, %c512] : memref<401x640xbf16, #tpu.memory_space<vmem>>, vector<401x128xbf16>
    %cst_13 = arith.constant dense<0.000000e+00> : vector<8x128xf32>
    %44 = tpu.matmul %3, %43, %cst_13 {dimension_numbers = #tpu.dot_dimension_numbers<[1], [0], [0], [1], [0, 0, 1, 1], [], []>} : vector<8x401xbf16>, vector<401x128xbf16>, vector<8x128xf32> -> vector<8x128xf32>
    %c6_i32 = arith.constant 6 : i32
    %45 = tpu.dynamic_rotate %44 by %c6_i32 dim 0 : vector<8x128xf32>, i32 -> vector<8x128xf32>
    %46 = vector.shape_cast %45 : vector<8x128xf32> to vector<1x8x128xf32>
    %c-2_i32 = arith.constant -2 : i32
    %47 = vector.broadcast %c-2_i32 : i32 to vector<1x8x128xi32>
    %48 = arith.cmpi sge, %0, %47 : vector<1x8x128xi32>
    %c6_i32_14 = arith.constant 6 : i32
    %49 = vector.broadcast %c6_i32_14 : i32 to vector<1x8x128xi32>
    %50 = arith.cmpi slt, %0, %49 : vector<1x8x128xi32>
    %51 = arith.andi %48, %50 : vector<1x8x128xi1>
    %cst_15 = arith.constant 0.000000e+00 : f32
    %52 = vector.broadcast %cst_15 : f32 to vector<1x8x128xf32>
    %53 = arith.select %51, %46, %52 : vector<1x8x128xi1>, vector<1x8x128xf32>
    %54 = arith.addf %42, %53 : vector<1x8x128xf32>
    %cst_16 = arith.constant dense<0xFF800000> : vector<1x128xf32>
    %55 = vector.multi_reduction <maximumf>, %54, %cst_16 [1] : vector<1x8x128xf32> to vector<1x128xf32>
    %c0_17 = arith.constant 0 : index
    %c0_18 = arith.constant 0 : index
    %56 = vector.load %arg4[%c0_17, %c0_18] : memref<1x128xf32, #tpu.memory_space<vmem>>, vector<1x128xf32>
    %57 = arith.addf %55, %56 : vector<1x128xf32>
    %58 = math.tanh %57 : vector<1x128xf32>
    %59 = vector.shape_cast %58 : vector<1x128xf32> to vector<1x1x128xf32>
    %c0_19 = arith.constant 0 : index
    %c0_20 = arith.constant 0 : index
    %c0_21 = arith.constant 0 : index
    %60 = vector.load %arg5[%c0_19, %c0_20, %c0_21] : memref<1x1x128xf32, #tpu.memory_space<vmem>>, vector<1x1x128xf32>
    tpu.vector_store %arg5[%c0_19, %c0_20, %c0_21], %59 {strides = array<i32>} : memref<1x1x128xf32, #tpu.memory_space<vmem>>, vector<1x1x128xf32>,
    %c0_22 = arith.constant 0 : index
    %c0_23 = arith.constant 0 : index
    %c0_24 = arith.constant 0 : index
    %61 = vector.load %arg2[%c0_22, %c0_23, %c0_24] : memref<1x8x401xf32, #tpu.memory_space<vmem>>, vector<1x8x401xf32>
    %62 = vector.shape_cast %61 : vector<1x8x401xf32> to vector<8x401xf32>
    %63 = arith.truncf %62 : vector<8x401xf32> to vector<8x401xbf16>
    %c0_25 = arith.constant 0 : index
    %c0_26 = arith.constant 0 : index
    %64 = vector.load %arg3[%c0_25, %c0_26] : memref<401x640xbf16, #tpu.memory_space<vmem>>, vector<401x256xbf16>
    %cst_27 = arith.constant dense<0.000000e+00> : vector<8x256xf32>
    %65 = tpu.matmul %63, %64, %cst_27 {dimension_numbers = #tpu.dot_dimension_numbers<[1], [0], [0], [1], [0, 0, 1, 1], [], []>} : vector<8x401xbf16>, vector<401x256xbf16>, vector<8x256xf32> -> vector<8x256xf32>
    %66 = vector.extract_strided_slice %65 {offsets = [0, 0], sizes = [8, 128], strides = [1, 1]} : vector<8x256xf32> to vector<8x128xf32>
    %c2_i32_28 = arith.constant 2 : i32
    %67 = tpu.dynamic_rotate %66 by %c2_i32_28 dim 0 : vector<8x128xf32>, i32 -> vector<8x128xf32>
    %68 = vector.shape_cast %67 : vector<8x128xf32> to vector<1x8x128xf32>
    %c2_i32_29 = arith.constant 2 : i32
    %69 = vector.broadcast %c2_i32_29 : i32 to vector<1x8x128xi32>
    %70 = arith.cmpi sge, %0, %69 : vector<1x8x128xi32>
    %c10_i32_30 = arith.constant 10 : i32
    %71 = vector.broadcast %c10_i32_30 : i32 to vector<1x8x128xi32>
    %72 = arith.cmpi slt, %0, %71 : vector<1x8x128xi32>
    %73 = arith.andi %70, %72 : vector<1x8x128xi1>
    %cst_31 = arith.constant 0.000000e+00 : f32
    %74 = vector.broadcast %cst_31 : f32 to vector<1x8x128xf32>
    %75 = arith.select %73, %68, %74 : vector<1x8x128xi1>, vector<1x8x128xf32>
    %76 = vector.extract_strided_slice %65 {offsets = [0, 128], sizes = [8, 128], strides = [1, 1]} : vector<8x256xf32> to vector<8x128xf32>
    %c1_i32_32 = arith.constant 1 : i32
    %77 = tpu.dynamic_rotate %76 by %c1_i32_32 dim 0 : vector<8x128xf32>, i32 -> vector<8x128xf32>
    %78 = vector.shape_cast %77 : vector<8x128xf32> to vector<1x8x128xf32>
    %c1_i32_33 = arith.constant 1 : i32
    %79 = vector.broadcast %c1_i32_33 : i32 to vector<1x8x128xi32>
    %80 = arith.cmpi sge, %0, %79 : vector<1x8x128xi32>
    %c9_i32_34 = arith.constant 9 : i32
    %81 = vector.broadcast %c9_i32_34 : i32 to vector<1x8x128xi32>
    %82 = arith.cmpi slt, %0, %81 : vector<1x8x128xi32>
    %83 = arith.andi %80, %82 : vector<1x8x128xi1>
    %cst_35 = arith.constant 0.000000e+00 : f32
    %84 = vector.broadcast %cst_35 : f32 to vector<1x8x128xf32>
    %85 = arith.select %83, %78, %84 : vector<1x8x128xi1>, vector<1x8x128xf32>
    %86 = arith.addf %75, %85 : vector<1x8x128xf32>
    %c0_36 = arith.constant 0 : index
    %c256_37 = arith.constant 256 : index
    %87 = vector.load %arg3[%c0_36, %c256_37] : memref<401x640xbf16, #tpu.memory_space<vmem>>, vector<401x256xbf16>
    %cst_38 = arith.constant dense<0.000000e+00> : vector<8x256xf32>
    %88 = tpu.matmul %63, %87, %cst_38 {dimension_numbers = #tpu.dot_dimension_numbers<[1], [0], [0], [1], [0, 0, 1, 1], [], []>} : vector<8x401xbf16>, vector<401x256xbf16>, vector<8x256xf32> -> vector<8x256xf32>
    %89 = vector.extract_strided_slice %88 {offsets = [0, 0], sizes = [8, 128], strides = [1, 1]} : vector<8x256xf32> to vector<8x128xf32>
    %90 = vector.shape_cast %89 : vector<8x128xf32> to vector<1x8x128xf32>
    %91 = arith.addf %86, %90 : vector<1x8x128xf32>
    %92 = vector.extract_strided_slice %88 {offsets = [0, 128], sizes = [8, 128], strides = [1, 1]} : vector<8x256xf32> to vector<8x128xf32>
    %c7_i32_39 = arith.constant 7 : i32
    %93 = tpu.dynamic_rotate %92 by %c7_i32_39 dim 0 : vector<8x128xf32>, i32 -> vector<8x128xf32>
    %94 = vector.shape_cast %93 : vector<8x128xf32> to vector<1x8x128xf32>
    %c-1_i32_40 = arith.constant -1 : i32
    %95 = vector.broadcast %c-1_i32_40 : i32 to vector<1x8x128xi32>
    %96 = arith.cmpi sge, %0, %95 : vector<1x8x128xi32>
    %c7_i32_41 = arith.constant 7 : i32
    %97 = vector.broadcast %c7_i32_41 : i32 to vector<1x8x128xi32>
    %98 = arith.cmpi slt, %0, %97 : vector<1x8x128xi32>
    %99 = arith.andi %96, %98 : vector<1x8x128xi1>
    %cst_42 = arith.constant 0.000000e+00 : f32
    %100 = vector.broadcast %cst_42 : f32 to vector<1x8x128xf32>
    %101 = arith.select %99, %94, %100 : vector<1x8x128xi1>, vector<1x8x128xf32>
    %102 = arith.addf %91, %101 : vector<1x8x128xf32>
    %c0_43 = arith.constant 0 : index
    %c512_44 = arith.constant 512 : index
    %103 = vector.load %arg3[%c0_43, %c512_44] : memref<401x640xbf16, #tpu.memory_space<vmem>>, vector<401x128xbf16>
    %cst_45 = arith.constant dense<0.000000e+00> : vector<8x128xf32>
    %104 = tpu.matmul %63, %103, %cst_45 {dimension_numbers = #tpu.dot_dimension_numbers<[1], [0], [0], [1], [0, 0, 1, 1], [], []>} : vector<8x401xbf16>, vector<401x128xbf16>, vector<8x128xf32> -> vector<8x128xf32>
    %c6_i32_46 = arith.constant 6 : i32
    %105 = tpu.dynamic_rotate %104 by %c6_i32_46 dim 0 : vector<8x128xf32>, i32 -> vector<8x128xf32>
    %106 = vector.shape_cast %105 : vector<8x128xf32> to vector<1x8x128xf32>
    %c-2_i32_47 = arith.constant -2 : i32
    %107 = vector.broadcast %c-2_i32_47 : i32 to vector<1x8x128xi32>
    %108 = arith.cmpi sge, %0, %107 : vector<1x8x128xi32>
    %c6_i32_48 = arith.constant 6 : i32
    %109 = vector.broadcast %c6_i32_48 : i32 to vector<1x8x128xi32>
    %110 = arith.cmpi slt, %0, %109 : vector<1x8x128xi32>
    %111 = arith.andi %108, %110 : vector<1x8x128xi1>
    %cst_49 = arith.constant 0.000000e+00 : f32
    %112 = vector.broadcast %cst_49 : f32 to vector<1x8x128xf32>
    %113 = arith.select %111, %106, %112 : vector<1x8x128xi1>, vector<1x8x128xf32>
    %114 = arith.addf %102, %113 : vector<1x8x128xf32>
    %cst_50 = arith.constant dense<0xFF800000> : vector<1x128xf32>
    %115 = vector.multi_reduction <maximumf>, %114, %cst_50 [1] : vector<1x8x128xf32> to vector<1x128xf32>
    %c0_51 = arith.constant 0 : index
    %c0_52 = arith.constant 0 : index
    %116 = vector.load %arg4[%c0_51, %c0_52] : memref<1x128xf32, #tpu.memory_space<vmem>>, vector<1x128xf32>
    %117 = arith.addf %115, %116 : vector<1x128xf32>
    %118 = math.tanh %117 : vector<1x128xf32>
    %119 = vector.shape_cast %118 : vector<1x128xf32> to vector<1x1x128xf32>
    %c0_53 = arith.constant 0 : index
    %c0_54 = arith.constant 0 : index
    %c0_55 = arith.constant 0 : index
    %120 = vector.load %arg6[%c0_53, %c0_54, %c0_55] : memref<1x1x128xf32, #tpu.memory_space<vmem>>, vector<1x1x128xf32>
    tpu.vector_store %arg6[%c0_53, %c0_54, %c0_55], %119 {strides = array<i32>} : memref<1x1x128xf32, #tpu.memory_space<vmem>>, vector<1x1x128xf32>,
    return
  }
  func.func @transform_0(%arg0: i32) -> (i32, i32, i32) {
    %c0_i32 = arith.constant 0 : i32
    %c0_i32_0 = arith.constant 0 : i32
    %c0_i32_1 = arith.constant 0 : i32
    return %arg0, %c0_i32, %c0_i32_0 : i32, i32, i32
  }
  func.func @transform_1(%arg0: i32) -> (i32, i32, i32) {
    %c0_i32 = arith.constant 0 : i32
    %c0_i32_0 = arith.constant 0 : i32
    %c0_i32_1 = arith.constant 0 : i32
    return %arg0, %c0_i32, %c0_i32_0 : i32, i32, i32
  }
  func.func @transform_2(%arg0: i32) -> (i32, i32) {
    %c0_i32 = arith.constant 0 : i32
    %c0_i32_0 = arith.constant 0 : i32
    %c0_i32_1 = arith.constant 0 : i32
    return %c0_i32, %c0_i32_0 : i32, i32
  }
  func.func @transform_3(%arg0: i32) -> (i32, i32) {
    %c0_i32 = arith.constant 0 : i32
    %c0_i32_0 = arith.constant 0 : i32
    %c0_i32_1 = arith.constant 0 : i32
    return %c0_i32, %c0_i32_0 : i32, i32
  }
  func.func @transform_4(%arg0: i32) -> (i32, i32, i32) {
    %c0_i32 = arith.constant 0 : i32
    %c0_i32_0 = arith.constant 0 : i32
    %c0_i32_1 = arith.constant 0 : i32
    return %arg0, %c0_i32, %c0_i32_0 : i32, i32, i32
  }
  func.func @transform_5(%arg0: i32) -> (i32, i32, i32) {
    %c0_i32 = arith.constant 0 : i32
    %c0_i32_0 = arith.constant 0 : i32
    %c0_i32_1 = arith.constant 0 : i32
    return %arg0, %c0_i32, %c0_i32_0 : i32, i32, i32
  }
}

</mosaic_0001>

<bundles_post_ra>
// kernel: _lambda_.1
= control target key start
LH: loop header
LB: loop body
LE: loop exit
PB: predicated region body
PF: predicated region fallthrough
CT: control target
= control target key end

     0   :  { %s4656_s0 = inlined_call_operand.hbm [shape: f32[2,8,401], index: 0, kind: input, shape index: {}]   ;;  %s4657_s1 = inlined_call_operand.hbm [shape: f32[2,8,401], index: 1, kind: input, shape index: {}]   ;;  %s4658_s2 = inlined_call_operand.hbm [shape: bf16[401,640], index: 2, kind: input, shape index: {}]   ;;  %s4659_s3 = inlined_call_operand.vmem [shape: f32[1,128], index: 3, kind: input, shape index: {}]   ;;  %s4660_s4 = inlined_call_operand.hbm [shape: f32[2,1,128], index: 4, kind: output, shape index: {0}]   ;;  %s4661_s5 = inlined_call_operand.hbm [shape: f32[2,1,128], index: 5, kind: output, shape index: {1}]  }
   0x1   :  { %4665 = sst [smem:[#allocation19_spill]] %s4658_s2 }
   0x2   :  { %11 = vsyncpa [#allocation3], 0 }
   0x3   :  { %13 = vsyncpa [#allocation3 + $0x1], 0 }
   0x4   :  { %14 = vsyncpa [#allocation6], 0 }
   0x5   :  { %16 = vsyncpa [#allocation6 + $0x1], 0 }
   0x6   :  { %17 = vsyncpa [#allocation4], 0 }
   0x7   :  { %19 = vsyncpa [#allocation4 + $0x1], 0 }
   0x8   :  { %20 = vsyncpa [#allocation10], 0 }
   0x9   :  { %22 = vsyncpa [#allocation10 + $0x1], 0  ;;  %s4315_s18 = smov 0   ;;  %s4317_s19 = smov 0  }
   0xa   :  { %s4319_s20 = smov 0   ;;  %s4321_s21 = smov 0  }
   0xb LB: > { %4666 = sst [smem:[#allocation16_spill]] %s4275_s20  ;;  %s4339_s25 = sadd.s32 4294967295, %s4279_s21   ;;  %s4279_s21 = sphi %s4321_s21, %s4677_s21   ;;  %s4275_s20 = sphi %s4319_s20, %s4679_s20   ;;  %s4271_s19 = sphi %s4317_s19, %s4681_s19   ;;  %s4267_s18 = sphi %s4315_s18, %s4680_s18  }
   0xc   : > { %s4667_s2 = sld [smem:[#allocation19_spill]]  ;;  %p2732_p0 = scmp.ge.s32.totalorder %s4279_s21, 1 }
   0xd   : > { %p49_p1 = scmp.eq.s32.totalorder %s4339_s25, 0  ;;  %p179_p2 = scmp.lt.s32.totalorder %s4279_s21, 3 }
   0xe   : > { %s4281_s27 = smov [#allocation7]   ;;  %s4282_s29 = smov 320  }
   0xf   : > { %p4344_p3 = pnand %p2732_p0, %p179_p2  ;;  %s192_s28 = sshll.u32 %s4281_s27, 4  ;;  %s193_s28 = int_to_ptr.vmem [resolvable:$true] %s192_s28 }
  0x10   : > { %s4283_s30 = smov 20   ;;  %s2731_s6 = sadd.s32 4294967294, %s4279_s21  }
  0x11   : > { %p4021_p4 = pneg %p4344_p3  ;;  %s4355_s7 = sadd.s32 1, %s4279_s21  }
  0x12   : > { %s190_s24 = sshll.u32 %s4667_s2, 4  ;;  %4669 = sst [smem:[#allocation17_spill]] %s4355_s7  ;;  %s191_s24 = int_to_ptr.hbm [resolvable:$true] %s190_s24 }
  0x13   : > { %p4022_p6 = pnand %p4021_p4, %p49_p1  ;;  %s35_s8 = sadd.s32 1, %s4275_s20 }
  0x14   : > { %s32_s9 = ssub.s32 %s4279_s21, %s4355_s7  ;;  %p42_p7 = scmp.ne.s32.totalorder %s4275_s20, %s4271_s19 }
  0x15   : > { %4024 = dma.hbm_to_vmem [thread:$0]  (!%p4022_p6), %s191_s24, 16320, %s193_s28, [#allocation6], %s4282_s29, %s4282_s29, %s4283_s30  }
  0x16   : > { %p33_p8 = scmp.eq.s32.totalorder %s32_s9, 0  ;;  %p43_p9 = scmp.eq.s32.totalorder %s4279_s21, 0 }
  0x17   : > { %p48_p10 = scmp.ne.s32.totalorder %s4271_s19, %s4267_s18  ;;  %p140_p11 = scmp.eq.s32.totalorder %s4339_s25, 1 }
  0x18   : > { %s4367_s10 = scalar_select %p33_p8, %s4275_s20, %s35_s8  }
  0x19   : > { %p4369_p12 = por %p43_p9, %p42_p7  ;;  %p4375_p13 = por %p49_p1, %p48_p10 }
  0x1a   : > { %4670 = sst [smem:[#allocation18_spill]] %s4367_s10  ;;  %p4379_p0 = por %p140_p11, %p42_p7 }
  0x1b   : > { %p146_p2 = scmp.eq.s32.totalorder %s2731_s6, 1  ;;  %p4040_p4 = scmp.lt.s32.totalorder %s4279_s21, 2 }
  0x1c   : > { %s209_s14 = sand.u32 1, %s4275_s20   ;;  %s3757_s17 = sshll.u32 %s4279_s21, 5 }
  0x1d   : > { %p4385_p6 = por %p146_p2, %p48_p10  ;;  %s2735_s16 = sshll.u32 %s209_s14, 5 }
  0x1e   : > { %s218_s24 = scalar_lea.hbm %s4656_s0, %s3757_s17  ;;  %s213_s28 = scalar_lea.vmem [#allocation2], %s2735_s16 }
  0x1f   : > { %s220_s27 = sshll.u32 %s218_s24, 4  ;;  %s222_s29 = sshll.u32 %s213_s28, 4  ;;  %s221_s27 = int_to_ptr.hbm [resolvable:$true] %s220_s27  ;;  %s223_s29 = int_to_ptr.vmem [resolvable:$true] %s222_s29 }
  0x20   : > { %p4395_p7 = pnand %p4040_p4, %p4369_p12  ;;  %s238_s9 = scalar_lea.hbm %s4657_s1, %s3757_s17 }
  0x21   : > { %s229_s2 = sand.u32 1, %s4279_s21   ;;  %s210_s10 = scalar_lea.sflag [#allocation3], %s209_s14 }
  0x22   : > { %s4113_s22 = sshra.s32 %s221_s27, 4  ;;  %p4117_p9 = pneg %p4395_p7  ;;  %s4114_s22 = int_to_ptr.hbm [resolvable:$true] %s4113_s22 }
  0x23   : > { %s4115_s23 = scalar_lea.hbm %s4114_s22, 32  ;;  %s4120_s28 = scalar_lea.hbm %s4656_s0, 64 }
  0x24   : > { %p4116_p8 = scmp.ne.s32.totalorder %s4114_s22, %s4115_s23  ;;  %p4121_p12 = scmp.lt.s32.totalorder %s4114_s22, %s4656_s0 }
  0x25   : > { %p4122_p2 = scmp.lt.s32.totalorder %s4120_s28, %s4115_s23 }
  0x26   : > { %p4118_p10 = pnand %p4117_p9, %p4116_p8 }
  0x27   : > { %p4123_p4 = por %p4122_p2, %p4121_p12 }
  0x28   : > { %p4119_p11 = pneg %p4118_p10 }
  0x2a   : > { %p4124_p5 = pnand %p4123_p4, %p4119_p11 }
  0x2c   : > { %4127 = shalt.err (!%p4124_p5)
}
  0x2d   : > { %4028 = dma.hbm_to_vmem [thread:$0]  (!%p4395_p7), %s221_s27, 512, %s223_s29, %s210_s10  }
  0x2e   : > { %s240_s14 = sshll.u32 %s238_s9, 4  ;;  %s233_s17 = scalar_lea.vmem [#allocation5], %s2735_s16  ;;  %s241_s14 = int_to_ptr.hbm [resolvable:$true] %s240_s14 }
  0x2f   : > { %s242_s20 = sshll.u32 %s233_s17, 4  ;;  %s230_s7 = scalar_lea.sflag [#allocation6], %s229_s2  ;;  %s243_s20 = int_to_ptr.vmem [resolvable:$true] %s242_s20 }
  0x30   : > { %s4143_s11 = sshra.s32 %s241_s14, 4  ;;  %s4150_s28 = scalar_lea.hbm %s4657_s1, 64  ;;  %s4144_s11 = int_to_ptr.hbm [resolvable:$true] %s4143_s11 }
  0x31   : > { %s4145_s24 = scalar_lea.hbm %s4144_s11, 32  ;;  %p4151_p5 = scmp.lt.s32.totalorder %s4144_s11, %s4657_s1 }
  0x32   : > { %p4146_p8 = scmp.ne.s32.totalorder %s4144_s11, %s4145_s24  ;;  %p4152_p11 = scmp.lt.s32.totalorder %s4150_s28, %s4145_s24 }
  0x34   : > { %p4148_p10 = pnand %p4146_p8, %p4117_p9  ;;  %p4153_p2 = por %p4152_p11, %p4151_p5 }
  0x36   : > { %p4149_p12 = pneg %p4148_p10 }
  0x38   : > { %p4154_p4 = pnand %p4153_p2, %p4149_p12 }
  0x3a   : > { %4157 = shalt.err (!%p4154_p4)
}
  0x3b   : > { %4031 = dma.hbm_to_vmem [thread:$0]  (!%p4395_p7), %s241_s14, 512, %s243_s20, %s230_s7  }
  0x3c   : > { %251 = sbr.rel (%p4344_p3) target bundleno = 519 (0x207), region = 36  ;;  %s4430_s2 = sand.u32 (!%p4344_p3), 1, %s4271_s19  }
  0x3d   : > { %s2742_s16 = sshll.u32 (!%p4344_p3), %s4430_s2, 5  ;;  %s254_s27 = scalar_lea.sflag (!%p4344_p3), [#allocation3], %s4430_s2 }
  0x3e   : > { %s4434_s29 = scalar_lea.vmem (!%p4344_p3), [#allocation2], %s2742_s16 }
  0x41   : > { %4246 = dma.done.wait (%p4375_p13), %s254_s27, 512  }
  0x42   : > { %4248 = vsyncadd (%p4375_p13), %s254_s27, 4294966784  ;;  %s263_s20 = sand.u32 1, %s4339_s25   ;;  %s4441_s7 = scalar_lea.vmem [#allocation5], %s2742_s16 }
  0x43   : > { %s264_s26 = scalar_lea.sflag [#allocation6], %s263_s20 }
  0x44   : > { %4250 = dma.done.wait (%p4375_p13), %s264_s26, 512  }
  0x45   : > { %4252 = vsyncadd (%p4375_p13), %s264_s26, 4294966784 }
  0x46   : > { %4254 = dma.done.wait (%p49_p1), [#allocation6], 16320  }
  0x47   : > { %4256 = vsyncadd (%p49_p1), [#allocation6], 4294950976  ;;  %vm629_vm0 = vcmask 1040384   ;;  %v2803_v0 = vld [vmem:[#allocation7 + $0x118] sm:$0xf]  ;;  %v4284_v16 = vmov 0   ;;  %s2588_s14 = scalar_lea.hbm %s4660_s4, %s4339_s25 }
  0x48   : > { %v3774_v1 = vld [vmem:[#allocation7 + $0x128] sm:$0xf0]  ;;  %v2867_v2 = vld [vmem:[#allocation7 + $0x258] sm:$0xf]  ;;  %v2795_v5 = vld [vmem:[#allocation7 + $0xf0] sm:$0xf] }
  0x49   : > { %v2804_v3 = vor.u32 %v3774_v1, %v2803_v0  ;;  %v3790_v4 = vld [vmem:[#allocation7 + $0x268] sm:$0xf0]  ;;  %v3772_v6 = vld [vmem:[#allocation7 + $0x100] sm:$0xf0]  ;;  %v2931_v9 = vld [vmem:[#allocation7 + $0x398] sm:$0xf] }
  0x4a   : > { %v2868_v7 = vor.u32 %v3790_v4, %v2867_v2  ;;  %v4451_v8 = vld [vmem:[#allocation7 + $0x3e8] sm:$0x11]  ;;  %v2796_v11 = vor.u32 %v3772_v6, %v2795_v5  ;;  %v2859_v14 = vld [vmem:[#allocation7 + $0x230] sm:$0xf]  ;;  %v3788_v15 = vld [vmem:[#allocation7 + $0x240] sm:$0xf0] }
  0x4b   : > { %v3806_v10 = vld [vmem:[#allocation7 + $0x3a8] sm:$0xf0]  ;;  %638 = vmatpush.bf16.msra.mxu0 %v2804_v3  ;;  %v521_v12 = vunpack.c.l.b16 %v4451_v8  ;;  %v4455_v17 = vsel %vm629_vm0, 65535, %v4284_v16  ;;  %v2860_v18 = vor.u32 %v3788_v15, %v2859_v14  ;;  %v2787_v19 = vld [vmem:[#allocation7 + $0xc8] sm:$0xf]  ;;  %v314_v15 = vld [vmem:[%s4434_s29 + $0x18] sm:$0xff] }
  0x4c   : > { %v2932_v13 = vor.u32 %v3806_v10, %v2931_v9  ;;  %651 = vmatpush.bf16.msra.mxu1 %v2868_v7  ;;  %v3770_v20 = vld [vmem:[#allocation7 + $0xd8] sm:$0xf0]  ;;  %v2939_v22 = vld [vmem:[#allocation7 + $0x3c0] sm:$0xf]  ;;  %v2923_v23 = vld [vmem:[#allocation7 + $0x370] sm:$0xf] }
  0x4d   : > { %v573_v21 = vpack.c.b16 %v521_v12, %v521_v12  ;;  %v3804_v24 = vld [vmem:[#allocation7 + $0x380] sm:$0xf0]  ;;  %v3808_v25 = vld [vmem:[#allocation7 + $0x3d0] sm:$0xf0]  ;;  %v2851_v27 = vld [vmem:[#allocation7 + $0x208] sm:$0xf]  ;;  %v2788_v30 = vor.u32 %v3770_v20, %v2787_v19  ;;  %v4459_v20 = vpack.c.bf16 %v314_v15, %v314_v15 }
  0x4e   : > { %664 = vmatpush.bf16.msra.mxu2 %v2932_v13  ;;  %v2924_v26 = vor.u32 %v3804_v24, %v2923_v23  ;;  %v3786_v28 = vld [vmem:[#allocation7 + $0x218] sm:$0xf0]  ;;  %v2805_v32 = vld [vmem:[#allocation7 + $0x12c] sm:$0xf0]  ;;  %v2915_v33 = vld [vmem:[#allocation7 + $0x348] sm:$0xf]  ;;  %v2940_v38 = vor.u32 %v3808_v25, %v2939_v22 }
  0x4f   : > { %639 = vmatpush.bf16.msra.mxu0 %v2796_v11  ;;  %v633_v29 = vand.u32 %v4455_v17, %v573_v21  ;;  %v3773_v31 = vld [vmem:[#allocation7 + $0x11c] sm:$0xf]  ;;  %v2852_v34 = vor.u32 %v3786_v28, %v2851_v27  ;;  %v2779_v35 = vld [vmem:[#allocation7 + $0xa0] sm:$0xf]  ;;  %v3768_v36 = vld [vmem:[#allocation7 + $0xb0] sm:$0xf0]  ;;  %v522_v21 = vunpack.c.h.b16 %v4451_v8 }
  0x50   : > { %652 = vmatpush.bf16.msra.mxu1 %v2860_v18  ;;  %v3802_v37 = vld [vmem:[#allocation7 + $0x358] sm:$0xf0]  ;;  %v2843_v40 = vld [vmem:[#allocation7 + $0x1e0] sm:$0xf]  ;;  %v3784_v41 = vld [vmem:[#allocation7 + $0x1f0] sm:$0xf0]  ;;  %v2808_v42 = vor.u32 %v3773_v31, %v2805_v32  ;;  %v2780_v45 = vor.u32 %v3768_v36, %v2779_v35 }
  0x51   : > { %683 = vmatpush.bf16.msra.mxu3 %v633_v29  ;;  %v2916_v39 = vor.u32 %v3802_v37, %v2915_v33  ;;  %v2907_v43 = vld [vmem:[#allocation7 + $0x320] sm:$0xf]  ;;  %v3800_v44 = vld [vmem:[#allocation7 + $0x330] sm:$0xf0]  ;;  %v2797_v47 = vld [vmem:[#allocation7 + $0x104] sm:$0xf0]  ;;  %v2844_v48 = vor.u32 %v3784_v41, %v2843_v40  ;;  %v574_v37 = vpack.c.b16 %v522_v21, %v522_v21 }
  0x52   : > { %665 = vmatpush.bf16.msra.mxu2 %v2924_v26  ;;  %v3771_v46 = vld [vmem:[#allocation7 + $0xf4] sm:$0xf]  ;;  %v2771_v49 = vld [vmem:[#allocation7 + $0x78] sm:$0xf]  ;;  %v3766_v50 = vld [vmem:[#allocation7 + $0x88] sm:$0xf0]  ;;  %v2908_v51 = vor.u32 %v3800_v44, %v2907_v43 }
  0x53   : > { %640 = vmatpush.bf16.msra.mxu0 %v2788_v30  ;;  %v2835_v52 = vld [vmem:[#allocation7 + $0x1b8] sm:$0xf]  ;;  %v3782_v53 = vld [vmem:[#allocation7 + $0x1c8] sm:$0xf0]  ;;  %v2800_v54 = vor.u32 %v3771_v46, %v2797_v47  ;;  %v2772_v57 = vor.u32 %v3766_v50, %v2771_v49  ;;  %v2789_v59 = vld [vmem:[#allocation7 + $0xdc] sm:$0xf0] }
  0x54   : > { %653 = vmatpush.bf16.msra.mxu1 %v2852_v34  ;;  %v2899_v55 = vld [vmem:[#allocation7 + $0x2f8] sm:$0xf]  ;;  %v3798_v56 = vld [vmem:[#allocation7 + $0x308] sm:$0xf0]  ;;  %v2836_v60 = vor.u32 %v3782_v53, %v2835_v52  ;;  %v2763_v61 = vld [vmem:[#allocation7 + $0x50] sm:$0xf] }
  0x55   : > { %684 = vmatpush.bf16.msra.mxu3 %v2940_v38  ;;  %v3769_v58 = vld [vmem:[#allocation7 + $0xcc] sm:$0xf]  ;;  %v3764_v62 = vld [vmem:[#allocation7 + $0x60] sm:$0xf0]  ;;  %v2900_v63 = vor.u32 %v3798_v56, %v2899_v55  ;;  %v2827_v0 = vld [vmem:[#allocation7 + $0x190] sm:$0xf] }
  0x56   : > { %666 = vmatpush.bf16.msra.mxu2 %v2916_v39  ;;  %v3780_v1 = vld [vmem:[#allocation7 + $0x1a0] sm:$0xf0]  ;;  %v2792_v2 = vor.u32 %v3769_v58, %v2789_v59  ;;  %v2891_v3 = vld [vmem:[#allocation7 + $0x2d0] sm:$0xf]  ;;  %v2764_v5 = vor.u32 %v3764_v62, %v2763_v61  ;;  %v2781_v7 = vld [vmem:[#allocation7 + $0xb4] sm:$0xf0] }
  0x57   : > { %641 = vmatpush.bf16.msra.mxu0 %v2780_v45  ;;  %v3796_v4 = vld [vmem:[#allocation7 + $0x2e0] sm:$0xf0]  ;;  %v2828_v9 = vor.u32 %v3780_v1, %v2827_v0  ;;  %v2755_v10 = vld [vmem:[#allocation7 + $0x28] sm:$0xf]  ;;  %v3762_v11 = vld [vmem:[#allocation7 + $0x38] sm:$0xf0] }
  0x58   : > { %654 = vmatpush.bf16.msra.mxu1 %v2844_v48  ;;  %v3767_v6 = vld [vmem:[#allocation7 + $0xa4] sm:$0xf]  ;;  %v2892_v12 = vor.u32 %v3796_v4, %v2891_v3  ;;  %v2819_v13 = vld [vmem:[#allocation7 + $0x168] sm:$0xf]  ;;  %v3778_v14 = vld [vmem:[#allocation7 + $0x178] sm:$0xf0]  ;;  %v2756_v22 = vor.u32 %v3762_v11, %v2755_v10 }
  0x59   : > { %690 = vmatpush.bf16.msrb.mxu3 %v2808_v42  ;;  %vm625_vm1 = vcmask 138240   ;;  %v2784_v16 = vor.u32 %v3767_v6, %v2781_v7  ;;  %v2883_v18 = vld [vmem:[#allocation7 + $0x2a8] sm:$0xf]  ;;  %v3794_v19 = vld [vmem:[#allocation7 + $0x2b8] sm:$0xf0]  ;;  %v2820_v26 = vor.u32 %v3778_v14, %v2819_v13  ;;  %v311_v43 = vld [vmem:[%s4434_s29] sm:$0xff] }
  0x5a   : > { %667 = vmatpush.bf16.msra.mxu2 %v2908_v51  ;;  %v3765_v23 = vld [vmem:[#allocation7 + $0x7c] sm:$0xf]  ;;  %v2773_v24 = vld [vmem:[#allocation7 + $0x8c] sm:$0xf0]  ;;  %v2747_v25 = vld [vmem:[#allocation7] sm:$0xf]  ;;  %2945 = vmatmul.msk.bf16.vlgmr.msra.gmra.mxu3 %vm625_vm1, %v4459_v20  ;;  %v2884_v30 = vor.u32 %v3794_v19, %v2883_v18  ;;  %v4468_v58 = vpack.c.bf16 %v311_v43, %v311_v43 }
  0x5b   : > { %642 = vmatpush.bf16.msra.mxu0 %v2772_v57  ;;  %v3760_v27 = vld [vmem:[#allocation7 + $0x10] sm:$0xf0]  ;;  %v3789_v28 = vld [vmem:[#allocation7 + $0x25c] sm:$0xf]  ;;  %v2869_v29 = vld [vmem:[#allocation7 + $0x26c] sm:$0xf0]  ;;  %v2776_v33 = vor.u32 %v3765_v23, %v2773_v24 }
  0x5c   : > { %655 = vmatpush.bf16.msra.mxu1 %v2836_v60  ;;  %v2811_v31 = vld [vmem:[#allocation7 + $0x140] sm:$0xf]  ;;  %v3776_v32 = vld [vmem:[#allocation7 + $0x150] sm:$0xf0]  ;;  %v3805_v8 = vld [vmem:[#allocation7 + $0x39c] sm:$0xf]  ;;  %v2748_v38 = vor.u32 %v3760_v27, %v2747_v25  ;;  %v2872_v41 = vor.u32 %v3789_v28, %v2869_v29 }
  0x5d   : > { %691 = vmatpush.bf16.msrb.mxu3 %v2800_v54  ;;  %v2933_v34 = vld [vmem:[#allocation7 + $0x3ac] sm:$0xf0]  ;;  %v2875_v35 = vld [vmem:[#allocation7 + $0x280] sm:$0xf]  ;;  %v3792_v36 = vld [vmem:[#allocation7 + $0x290] sm:$0xf0]  ;;  %v2812_v42 = vor.u32 %v3776_v32, %v2811_v31  ;;  %v636_v54 = vand.u32 %v4455_v17, %v574_v37 }
  0x5e   : > { %668 = vmatpush.bf16.msra.mxu2 %v2900_v63  ;;  %v3763_v39 = vld [vmem:[#allocation7 + $0x54] sm:$0xf]  ;;  %v2765_v40 = vld [vmem:[#allocation7 + $0x64] sm:$0xf0]  ;;  %v2936_v45 = vor.u32 %v3805_v8, %v2933_v34  ;;  %v2876_v46 = vor.u32 %v3792_v36, %v2875_v35  ;;  %v3761_v51 = vld [vmem:[#allocation7 + $0x2c] sm:$0xf] }
  0x5f   : > { %643 = vmatpush.bf16.msra.mxu0 %v2764_v5  ;;  %v312_v44 = vld [vmem:[%s4434_s29 + $0x8] sm:$0xff]  ;;  %v3787_v47 = vld [vmem:[#allocation7 + $0x234] sm:$0xf]  ;;  %v2768_v50 = vor.u32 %v3763_v39, %v2765_v40  ;;  %v2757_v55 = vld [vmem:[#allocation7 + $0x3c] sm:$0xf0]  ;;  %s301_s17 = scalar_lea.vmem [#allocation8], %s4430_s2 }
  0x60   : > { %656 = vmatpush.bf16.msra.mxu1 %v2828_v9  ;;  %v2861_v48 = vld [vmem:[#allocation7 + $0x244] sm:$0xf0]  ;;  %v313_v49 = vld [vmem:[%s4434_s29 + $0x10] sm:$0xff]  ;;  %v3807_v56 = vld [vmem:[#allocation7 + $0x3c4] sm:$0xf]  ;;  %v4470_v59 = vpack.c.bf16 %v312_v44, %v312_v44  ;;  %v2760_v3 = vor.u32 %v3761_v51, %v2757_v55  ;;  %s2590_s11 = sshll.u32 %s301_s17, 4  ;;  %s2591_s11 = int_to_ptr.vmem [resolvable:$true] %s2590_s11 }
  0x61   : > { %692 = vmatpush.bf16.msrb.mxu3 %v2792_v2  ;;  %v3803_v52 = vld [vmem:[#allocation7 + $0x374] sm:$0xf]  ;;  %v2925_v53 = vld [vmem:[#allocation7 + $0x384] sm:$0xf0]  ;;  %v2941_v57 = vld [vmem:[#allocation7 + $0x3d4] sm:$0xf0]  ;;  %v2864_v60 = vor.u32 %v3787_v47, %v2861_v48  ;;  %v4472_v61 = vpack.c.bf16 %v313_v49, %v313_v49 }
  0x62   : > { %669 = vmatpush.bf16.msra.mxu2 %v2892_v12  ;;  %v3069_v62 = vld [vmem:[#allocation7 + $0x260] sm:$0xf]  ;;  %v3840_v63 = vld [vmem:[#allocation7 + $0x270] sm:$0xf0]  ;;  %v2928_v0 = vor.u32 %v3803_v52, %v2925_v53  ;;  %v3785_v1 = vld [vmem:[#allocation7 + $0x20c] sm:$0xf]  ;;  %v2944_v6 = vor.u32 %v3807_v56, %v2941_v57 }
  0x63   : > { %644 = vmatpush.bf16.msra.mxu0 %v2756_v22  ;;  %v2853_v2 = vld [vmem:[#allocation7 + $0x21c] sm:$0xf0]  ;;  %v3801_v4 = vld [vmem:[#allocation7 + $0x34c] sm:$0xf]  ;;  %v3759_v7 = vld [vmem:[#allocation7 + $0x4] sm:$0xf]  ;;  %v3070_v11 = vor.u32 %v3840_v63, %v3069_v62 }
  0x64   : > { %657 = vmatpush.bf16.msra.mxu1 %v2820_v26  ;;  %v2917_v5 = vld [vmem:[#allocation7 + $0x35c] sm:$0xf0]  ;;  %v2749_v9 = vld [vmem:[#allocation7 + $0x14] sm:$0xf0]  ;;  %v2856_v12 = vor.u32 %v3785_v1, %v2853_v2  ;;  %v3824_v13 = vld [vmem:[#allocation7 + $0x130] sm:$0xf0] }
  0x65   : > { %693 = vmatpush.bf16.msrb.mxu3 %v2784_v16  ;;  %v3005_v10 = vld [vmem:[#allocation7 + $0x120] sm:$0xf]  ;;  %v3061_v14 = vld [vmem:[#allocation7 + $0x238] sm:$0xf]  ;;  %v3838_v15 = vld [vmem:[#allocation7 + $0x248] sm:$0xf0]  ;;  %v2920_v16 = vor.u32 %v3801_v4, %v2917_v5  ;;  %v2752_v21 = vor.u32 %v3759_v7, %v2749_v9 }
  0x66   : > { %670 = vmatpush.bf16.msra.mxu2 %v2884_v30  ;;  %v3783_v18 = vld [vmem:[#allocation7 + $0x1e4] sm:$0xf]  ;;  %v2845_v19 = vld [vmem:[#allocation7 + $0x1f4] sm:$0xf0]  ;;  %v3006_v24 = vor.u32 %v3824_v13, %v3005_v10  ;;  %v3062_v26 = vor.u32 %v3838_v15, %v3061_v14  ;;  %v3822_v28 = vld [vmem:[#allocation7 + $0x108] sm:$0xf0] }
  0x67   : > { %645 = vmatpush.bf16.msra.mxu0 %v2748_v38  ;;  %v3799_v22 = vld [vmem:[#allocation7 + $0x324] sm:$0xf]  ;;  %v2909_v23 = vld [vmem:[#allocation7 + $0x334] sm:$0xf0]  ;;  %v2848_v27 = vor.u32 %v3783_v18, %v2845_v19  ;;  %v3053_v29 = vld [vmem:[#allocation7 + $0x210] sm:$0xf] }
  0x68   : > { %658 = vmatpush.bf16.msra.mxu1 %v2812_v42  ;;  %v2997_v25 = vld [vmem:[#allocation7 + $0xf8] sm:$0xf]  ;;  %v3836_v30 = vld [vmem:[#allocation7 + $0x220] sm:$0xf0]  ;;  %v2912_v31 = vor.u32 %v3799_v22, %v2909_v23  ;;  %v3781_v32 = vld [vmem:[#allocation7 + $0x1bc] sm:$0xf] }
  0x69   : > { %694 = vmatpush.bf16.msrb.mxu3 %v2776_v33  ;;  %v2837_v8 = vld [vmem:[#allocation7 + $0x1cc] sm:$0xf0]  ;;  %v3797_v33 = vld [vmem:[#allocation7 + $0x2fc] sm:$0xf]  ;;  %v2998_v35 = vor.u32 %v3822_v28, %v2997_v25  ;;  %v3054_v37 = vor.u32 %v3836_v30, %v3053_v29  ;;  %v3820_v39 = vld [vmem:[#allocation7 + $0xe0] sm:$0xf0] }
  0x6a   : > { %671 = vmatpush.bf16.msra.mxu2 %v2876_v46  ;;  %646 = vmatmul.bf16.vlgmr.msra.gmra.mxu0 %v4468_v58  ;;  %v2901_v34 = vld [vmem:[#allocation7 + $0x30c] sm:$0xf0]  ;;  %v2840_v38 = vor.u32 %v3781_v32, %v2837_v8  ;;  %v3045_v40 = vld [vmem:[#allocation7 + $0x1e8] sm:$0xf]  ;;  %v3779_v43 = vld [vmem:[#allocation7 + $0x194] sm:$0xf] }
  0x6b   : > { %703 = vmatpush.bf16.msrb.mxu0 %v2872_v41  ;;  %659 = vmatmul.bf16.vlgmr.msra.gmra.mxu1 %v4470_v59  ;;  %v2989_v36 = vld [vmem:[#allocation7 + $0xd0] sm:$0xf]  ;;  %v3834_v41 = vld [vmem:[#allocation7 + $0x1f8] sm:$0xf0]  ;;  %v2904_v42 = vor.u32 %v3797_v33, %v2901_v34  ;;  %v2829_v44 = vld [vmem:[#allocation7 + $0x1a4] sm:$0xf0] }
  0x6c   : > { %716 = vmatpush.bf16.msrb.mxu1 %v2936_v45  ;;  %v3795_v45 = vld [vmem:[#allocation7 + $0x2d4] sm:$0xf]  ;;  %v2893_v46 = vld [vmem:[#allocation7 + $0x2e4] sm:$0xf0]  ;;  %v2990_v47 = vor.u32 %v3820_v39, %v2989_v36  ;;  %v3818_v49 = vld [vmem:[#allocation7 + $0xb8] sm:$0xf0]  ;;  %v2832_v51 = vor.u32 %v3779_v43, %v2829_v44 }
  0x6d   : > { %695 = vmatpush.bf16.msrb.mxu3 %v2768_v50  ;;  %672 = vmatmul.bf16.vlgmr.msra.gmra.mxu2 %v4472_v61  ;;  %v2981_v48 = vld [vmem:[#allocation7 + $0xa8] sm:$0xf]  ;;  %v3046_v50 = vor.u32 %v3834_v41, %v3045_v40  ;;  %v3037_v52 = vld [vmem:[#allocation7 + $0x1c0] sm:$0xf]  ;;  %v3832_v53 = vld [vmem:[#allocation7 + $0x1d0] sm:$0xf0]  ;;  %v2896_v55 = vor.u32 %v3795_v45, %v2893_v46 }
  0x6e   : > { %735 = vmatpush.bf16.msrb.mxu2 %v636_v54  ;;  %v4478_v54 = vld [vmem:[#allocation7 + $0x3f0] sm:$0x11]  ;;  %v3777_v56 = vld [vmem:[#allocation7 + $0x16c] sm:$0xf]  ;;  %v2821_v57 = vld [vmem:[#allocation7 + $0x17c] sm:$0xf0]  ;;  %v3038_v2 = vor.u32 %v3832_v53, %v3037_v52 }
  0x6f   : > { %704 = vmatpush.bf16.msrb.mxu0 %v2864_v60  ;;  %v3793_v60 = vld [vmem:[#allocation7 + $0x2ac] sm:$0xf]  ;;  %v2885_v62 = vld [vmem:[#allocation7 + $0x2bc] sm:$0xf0]  ;;  %v955_v63 = vunpack.c.l.b16 %v4478_v54  ;;  %v3816_v4 = vld [vmem:[#allocation7 + $0x90] sm:$0xf0] }
  0x70   : > { %717 = vmatpush.bf16.msrb.mxu1 %v2928_v0  ;;  %v2982_v0 = vor.u32 %v3818_v49, %v2981_v48  ;;  %v2973_v1 = vld [vmem:[#allocation7 + $0x80] sm:$0xf]  ;;  %v3029_v5 = vld [vmem:[#allocation7 + $0x198] sm:$0xf]  ;;  %v2888_v7 = vor.u32 %v3793_v60, %v2885_v62  ;;  %v3775_v9 = vld [vmem:[#allocation7 + $0x144] sm:$0xf] }
  0x71   : > { %696 = vmatpush.bf16.msrb.mxu3 %v2760_v3  ;;  %v2824_v3 = vor.u32 %v3777_v56, %v2821_v57  ;;  %v2813_v10 = vld [vmem:[#allocation7 + $0x154] sm:$0xf0]  ;;  %v3791_v13 = vld [vmem:[#allocation7 + $0x284] sm:$0xf]  ;;  %v1007_v15 = vpack.c.b16 %v955_v63, %v955_v63  ;;  %v3814_v22 = vld [vmem:[#allocation7 + $0x68] sm:$0xf0] }
  0x72   : > { %736 = vmatpush.bf16.msrb.mxu2 %v2944_v6  ;;  %v3830_v6 = vld [vmem:[#allocation7 + $0x1a8] sm:$0xf0]  ;;  %v2877_v14 = vld [vmem:[#allocation7 + $0x294] sm:$0xf0]  ;;  %v2816_v19 = vor.u32 %v3775_v9, %v2813_v10  ;;  %v3021_v25 = vld [vmem:[#allocation7 + $0x170] sm:$0xf] }
  0x73   : > { %705 = vmatpush.bf16.msrb.mxu0 %v2856_v12  ;;  %v3856_v12 = vld [vmem:[#allocation7 + $0x3b0] sm:$0xf0]  ;;  %v3030_v18 = vor.u32 %v3830_v6, %v3029_v5  ;;  %v3854_v28 = vld [vmem:[#allocation7 + $0x388] sm:$0xf0]  ;;  %v1060_v29 = vand.u32 %v1007_v15, %v4455_v17  ;;  %v3141_v32 = vld [vmem:[#allocation7 + $0x3c8] sm:$0xf] }
  0x74   : > { %718 = vmatpush.bf16.msrb.mxu1 %v2920_v16  ;;  %v2974_v16 = vor.u32 %v3816_v4, %v2973_v1  ;;  %v3858_v8 = vld [vmem:[#allocation7 + $0x3d8] sm:$0xf0]  ;;  %v3812_v33 = vld [vmem:[#allocation7 + $0x40] sm:$0xf0]  ;;  %v3071_v36 = vld [vmem:[#allocation7 + $0x274] sm:$0xf0] }
  0x75   : > { %697 = vmatpush.bf16.msrb.mxu3 %v2752_v21  ;;  %v2965_v21 = vld [vmem:[#allocation7 + $0x58] sm:$0xf]  ;;  %v3013_v39 = vld [vmem:[#allocation7 + $0x148] sm:$0xf]  ;;  %v3826_v40 = vld [vmem:[#allocation7 + $0x158] sm:$0xf0]  ;;  %v3142_v44 = vor.u32 %v3858_v8, %v3141_v32 }
  0x76   : > { %1078 = vmatpush.bf16.msra.mxu2 %v3070_v11  ;;  %v3133_v11 = vld [vmem:[#allocation7 + $0x3a0] sm:$0xf]  ;;  %v2966_v30 = vor.u32 %v3814_v22, %v2965_v21  ;;  %v3852_v41 = vld [vmem:[#allocation7 + $0x360] sm:$0xf0]  ;;  %v3135_v43 = vld [vmem:[#allocation7 + $0x3b4] sm:$0xf0]  ;;  %v3014_v49 = vor.u32 %v3826_v40, %v3013_v39  ;;  %v956_v39 = vunpack.c.h.b16 %v4478_v54 }
  0x77   : > { %706 = vmatpush.bf16.msrb.mxu0 %v2848_v27  ;;  %v3134_v23 = vor.u32 %v3856_v12, %v3133_v11  ;;  %v3125_v27 = vld [vmem:[#allocation7 + $0x378] sm:$0xf]  ;;  %v2949_v46 = vld [vmem:[#allocation7 + $0x8] sm:$0xf]  ;;  %v3810_v48 = vld [vmem:[#allocation7 + $0x18] sm:$0xf0] }
  0x78   : > { %719 = vmatpush.bf16.msrb.mxu1 %v2912_v31  ;;  %698 = vmatmul.bf16.vlgmr.msrb.gmra.mxu3 %v4468_v58  ;;  %v2957_v31 = vld [vmem:[#allocation7 + $0x30] sm:$0xf]  ;;  %v3823_v53 = vld [vmem:[#allocation7 + $0x124] sm:$0xf]  ;;  %v3109_v57 = vld [vmem:[#allocation7 + $0x328] sm:$0xf]  ;;  %v1008_v54 = vpack.c.b16 %v956_v39, %v956_v39 }
  0x79   : > { %1065 = vmatpush.bf16.msra.mxu3 %v3006_v24  ;;  %v2880_v24 = vor.u32 %v3791_v13, %v2877_v14  ;;  %v2958_v45 = vor.u32 %v3812_v33, %v2957_v31  ;;  %v3850_v60 = vld [vmem:[#allocation7 + $0x338] sm:$0xf0]  ;;  %v3127_v63 = vld [vmem:[#allocation7 + $0x38c] sm:$0xf0]  ;;  %v3055_v4 = vld [vmem:[#allocation7 + $0x224] sm:$0xf0] }
  0x7a   : > { %1079 = vmatpush.bf16.msra.mxu2 %v3062_v26  ;;  %v3828_v26 = vld [vmem:[#allocation7 + $0x180] sm:$0xf0]  ;;  %v3853_v62 = vld [vmem:[#allocation7 + $0x37c] sm:$0xf]  ;;  %v3110_v5 = vor.u32 %v3850_v60, %v3109_v57  ;;  %v3101_v10 = vld [vmem:[#allocation7 + $0x300] sm:$0xf] }
  0x7b   : > { %707 = vmatpush.bf16.msrb.mxu0 %v2840_v38  ;;  %v3022_v34 = vor.u32 %v3828_v26, %v3021_v25  ;;  %v3117_v38 = vld [vmem:[#allocation7 + $0x350] sm:$0xf]  ;;  %v3821_v6 = vld [vmem:[#allocation7 + $0xfc] sm:$0xf]  ;;  %v3130_v9 = vor.u32 %v3853_v62, %v3127_v63  ;;  %v3848_v11 = vld [vmem:[#allocation7 + $0x310] sm:$0xf0] }
  0x7c   : > { %720 = vmatpush.bf16.msrb.mxu1 %v2904_v42  ;;  %v3855_v42 = vld [vmem:[#allocation7 + $0x3a4] sm:$0xf]  ;;  %v3118_v52 = vor.u32 %v3852_v41, %v3117_v38  ;;  %v3851_v12 = vld [vmem:[#allocation7 + $0x354] sm:$0xf]  ;;  %v3119_v13 = vld [vmem:[#allocation7 + $0x364] sm:$0xf0] }
  0x7d   : > { %1066 = vmatpush.bf16.msra.mxu3 %v2998_v35  ;;  %2946 = vmatmul.msk.bf16.vlgmr.msrb.gmra.mxu2 %vm625_vm1, %v4459_v20  ;;  %v3839_v35 = vld [vmem:[#allocation7 + $0x264] sm:$0xf]  ;;  %v3138_v56 = vor.u32 %v3855_v42, %v3135_v43  ;;  %v3819_v21 = vld [vmem:[#allocation7 + $0xd4] sm:$0xf]  ;;  %v2991_v22 = vld [vmem:[#allocation7 + $0xe4] sm:$0xf0] }
  0x7e   : > { %1080 = vmatpush.bf16.msra.mxu2 %v3054_v37  ;;  %v3126_v37 = vor.u32 %v3854_v28, %v3125_v27  ;;  %v3846_v25 = vld [vmem:[#allocation7 + $0x2e8] sm:$0xf0]  ;;  %v3111_v27 = vld [vmem:[#allocation7 + $0x33c] sm:$0xf0]  ;;  %v3039_v31 = vld [vmem:[#allocation7 + $0x1d4] sm:$0xf0] }
  0x7f   : > { %708 = vmatpush.bf16.msrb.mxu0 %v2832_v51  ;;  %v3063_v51 = vld [vmem:[#allocation7 + $0x24c] sm:$0xf0]  ;;  %v3849_v26 = vld [vmem:[#allocation7 + $0x32c] sm:$0xf]  ;;  %v2983_v33 = vld [vmem:[#allocation7 + $0xbc] sm:$0xf0] }
  0x80   : > { %721 = vmatpush.bf16.msrb.mxu1 %v2896_v55  ;;  %v3007_v55 = vld [vmem:[#allocation7 + $0x134] sm:$0xf0]  ;;  %v3817_v8 = vld [vmem:[#allocation7 + $0xac] sm:$0xf]  ;;  %v3829_v42 = vld [vmem:[#allocation7 + $0x19c] sm:$0xf] }
  0x81   : > { %1067 = vmatpush.bf16.msra.mxu3 %v2990_v47  ;;  %v3074_v47 = vor.u32 %v3839_v35, %v3071_v36  ;;  %v3085_v35 = vld [vmem:[#allocation7 + $0x2b0] sm:$0xf]  ;;  %v3844_v36 = vld [vmem:[#allocation7 + $0x2c0] sm:$0xf0]  ;;  %v3103_v38 = vld [vmem:[#allocation7 + $0x314] sm:$0xf0]  ;;  %v2986_v41 = vor.u32 %v3817_v8, %v2983_v33 }
  0x82   : > { %1081 = vmatpush.bf16.msra.mxu2 %v3046_v50  ;;  %v3837_v50 = vld [vmem:[#allocation7 + $0x23c] sm:$0xf]  ;;  %v3031_v43 = vld [vmem:[#allocation7 + $0x1ac] sm:$0xf0]  ;;  %v3023_v57 = vld [vmem:[#allocation7 + $0x184] sm:$0xf0] }
  0x83   : > { %709 = vmatpush.bf16.msrb.mxu0 %v2824_v3  ;;  %v3066_v1 = vor.u32 %v3837_v50, %v3063_v51  ;;  %v3835_v3 = vld [vmem:[#allocation7 + $0x214] sm:$0xf]  ;;  %v3845_v50 = vld [vmem:[#allocation7 + $0x2dc] sm:$0xf]  ;;  %v3095_v51 = vld [vmem:[#allocation7 + $0x2ec] sm:$0xf0] }
  0x84   : > { %722 = vmatpush.bf16.msrb.mxu1 %v2888_v7  ;;  %v2999_v7 = vld [vmem:[#allocation7 + $0x10c] sm:$0xf0]  ;;  %v3058_v14 = vor.u32 %v3835_v3, %v3055_v4  ;;  %v3813_v62 = vld [vmem:[#allocation7 + $0x5c] sm:$0xf]  ;;  %v3087_v3 = vld [vmem:[#allocation7 + $0x2c4] sm:$0xf0] }
  0x85   : > { %1068 = vmatpush.bf16.msra.mxu3 %v2982_v0  ;;  %v2950_v0 = vor.u32 %v3810_v48, %v2949_v46  ;;  %v3002_v15 = vor.u32 %v3821_v6, %v2999_v7  ;;  %v2975_v46 = vld [vmem:[#allocation7 + $0x94] sm:$0xf0]  ;;  %v3077_v48 = vld [vmem:[#allocation7 + $0x288] sm:$0xf]  ;;  %v2967_v63 = vld [vmem:[#allocation7 + $0x6c] sm:$0xf0] }
  0x86   : > { %1082 = vmatpush.bf16.msra.mxu2 %v3038_v2  ;;  %v3010_v2 = vor.u32 %v3823_v53, %v3007_v55  ;;  %v1226_v53 = vld [vmem:[#allocation7 + $0x3f8] sm:$0x1]  ;;  %v3857_v6 = vld [vmem:[#allocation7 + $0x3cc] sm:$0xf]  ;;  %v3143_v7 = vld [vmem:[#allocation7 + $0x3dc] sm:$0xf0] }
  0x87   : > { %710 = vmatpush.bf16.msrb.mxu0 %v2816_v19  ;;  %v3102_v19 = vor.u32 %v3848_v11, %v3101_v10  ;;  %v1328_v4 = vunpack.c.l.b16 %v1226_v53  ;;  %v2970_v11 = vor.u32 %v3813_v62, %v2967_v63  ;;  %v3179_v8 = vld [vmem:[#allocation7 + $0x128] sm:$0xf]  ;;  %v3247_v39 = vld [vmem:[#allocation7 + $0x3d0] sm:$0xf]  ;;  %s2592_s24 = sshll.u32 %s2588_s14, 4  ;;  %s2576_s22 = scalar_lea.sflag [#allocation4], %s4430_s2  ;;  %s2593_s24 = int_to_ptr.hbm [resolvable:$true] %s2592_s24 }
  0x88   : > { %723 = vmatpush.bf16.msrb.mxu1 %v2880_v24  ;;  %v3093_v24 = vld [vmem:[#allocation7 + $0x2d8] sm:$0xf]  ;;  %v3199_v53 = vld [vmem:[#allocation7 + $0x1f0] sm:$0xf]  ;;  %s4187_s23 = sshra.s32 %s2593_s24, 4  ;;  %s4193_s16 = scalar_lea.hbm %s4660_s4, 2  ;;  %s4188_s23 = int_to_ptr.hbm [resolvable:$true] %s4187_s23 }
  0x89   : > { %1069 = vmatpush.bf16.msra.mxu3 %v2974_v16  ;;  %v3833_v16 = vld [vmem:[#allocation7 + $0x1ec] sm:$0xf]  ;;  %v3094_v32 = vor.u32 %v3846_v25, %v3093_v24  ;;  %v1354_v24 = vpack.c.b16 %v1328_v4, %v1328_v4  ;;  %v3300_v63 = vld [vmem:[#allocation7 + $0xf0] sm:$0xf]  ;;  %s4189_s28 = scalar_lea.hbm %s4188_s23, 1  ;;  %p4194_p7 = scmp.lt.s32.totalorder %s4188_s23, %s4660_s4 }
  0x8a   : > { %1083 = vmatpush.bf16.msra.mxu2 %v3030_v18  ;;  %711 = vmatmul.bf16.vlgmr.msrb.gmra.mxu0 %v4470_v59  ;;  %v3047_v18 = vld [vmem:[#allocation7 + $0x1fc] sm:$0xf0]  ;;  %p4190_p1 = scmp.ne.s32.totalorder %s4188_s23, %s4189_s28  ;;  %p4195_p9 = scmp.lt.s32.totalorder %s4193_s16, %s4189_s28 }
  0x8b   : > { %1091 = vmatpush.bf16.msra.mxu0 %v3134_v23  ;;  %724 = vmatmul.bf16.vlgmr.msrb.gmra.mxu1 %v4472_v61  ;;  %v3122_v23 = vor.u32 %v3851_v12, %v3119_v13  ;;  %v3050_v28 = vor.u32 %v3833_v16, %v3047_v18  ;;  %v3874_v12 = vld [vmem:[#allocation7 + $0x278] sm:$0xf0]  ;;  %v3825_v13 = vld [vmem:[#allocation7 + $0x14c] sm:$0xf]  ;;  %v3243_v18 = vld [vmem:[#allocation7 + $0x3a8] sm:$0xf] }
  0x8c   : > { %1110 = vmatpush.bf16.msra.mxu1 %v1060_v29  ;;  %v2994_v29 = vor.u32 %v3819_v21, %v2991_v22  ;;  %v3146_v21 = vor.u32 %v3857_v6, %v3143_v7  ;;  %v3841_v22 = vld [vmem:[#allocation7 + $0x28c] sm:$0xf]  ;;  %v3870_v6 = vld [vmem:[#allocation7 + $0x1d8] sm:$0xf0]  ;;  %p4191_p3 = pnand %p4190_p1, %p4379_p0  ;;  %p4196_p8 = por %p4195_p9, %p4194_p7 }
  0x8d   : > { %1070 = vmatpush.bf16.msra.mxu3 %v2966_v30  ;;  %v3831_v30 = vld [vmem:[#allocation7 + $0x1c4] sm:$0xf] }
  0x8e   : > { %1084 = vmatpush.bf16.msra.mxu2 %v3022_v34  ;;  %v3114_v34 = vor.u32 %v3849_v26, %v3111_v27  ;;  %v3042_v40 = vor.u32 %v3831_v30, %v3039_v31  ;;  %v3809_v31 = vld [vmem:[#allocation7 + $0xc] sm:$0xf]  ;;  %p4192_p13 = pneg %p4191_p3 }
  0x8f   : > { %1092 = vmatpush.bf16.msra.mxu0 %v3126_v37  ;;  %v3847_v37 = vld [vmem:[#allocation7 + $0x304] sm:$0xf] }
  0x90   : > { %1111 = vmatpush.bf16.msra.mxu1 %v3142_v44  ;;  %v3086_v44 = vor.u32 %v3844_v36, %v3085_v35  ;;  %v1381_v35 = vand.u32 %v1354_v24, %v4455_v17  ;;  %v3239_v36 = vld [vmem:[#allocation7 + $0x380] sm:$0xf]  ;;  %v3163_v24 = vld [vmem:[#allocation7 + $0x88] sm:$0xf]  ;;  %p4197_p10 = pnand %p4196_p8, %p4192_p13 }
  0x91   : > { %1071 = vmatpush.bf16.msra.mxu3 %v2958_v45  ;;  %v3815_v45 = vld [vmem:[#allocation7 + $0x84] sm:$0xf] }
  0x92   : > { %1085 = vmatpush.bf16.msra.mxu2 %v3014_v49  ;;  %v3842_v49 = vld [vmem:[#allocation7 + $0x298] sm:$0xf0]  ;;  %v2978_v55 = vor.u32 %v3815_v45, %v2975_v46  ;;  %v3175_v45 = vld [vmem:[#allocation7 + $0x100] sm:$0xf] }
  0x93   : > { %1093 = vmatpush.bf16.msra.mxu0 %v3118_v52  ;;  %v3034_v52 = vor.u32 %v3829_v42, %v3031_v43  ;;  %v3078_v60 = vor.u32 %v3842_v49, %v3077_v48  ;;  %v3203_v42 = vld [vmem:[#allocation7 + $0x218] sm:$0xf]  ;;  %v3872_v43 = vld [vmem:[#allocation7 + $0x228] sm:$0xf0]  ;;  %v3865_v49 = vld [vmem:[#allocation7 + $0x110] sm:$0xf0] }
  0x94   : > { %1130 = vmatpush.bf16.msrb.mxu1 %v3074_v47  ;;  %v3106_v47 = vor.u32 %v3847_v37, %v3103_v38  ;;  %v3881_v37 = vld [vmem:[#allocation7 + $0x390] sm:$0xf0]  ;;  %v3899_v48 = vld [vmem:[#allocation7 + $0x128] sm:$0xf0] }
  0x95   : > { %1072 = vmatpush.bf16.msra.mxu3 %v2950_v0  ;;  %1086 = vmatmul.bf16.vlgmr.msra.gmra.mxu2 %v4470_v59  ;;  %v3098_v0 = vor.u32 %v3845_v50, %v3095_v51  ;;  %v3240_v46 = vor.u32 %v3881_v37, %v3239_v36  ;;  %v3235_v51 = vld [vmem:[#allocation7 + $0x358] sm:$0xf]  ;;  %v3159_v36 = vld [vmem:[#allocation7 + $0x60] sm:$0xf] }
  0x96   : > { %1143 = vmatpush.bf16.msrb.mxu2 %v3138_v56  ;;  %v3827_v56 = vld [vmem:[#allocation7 + $0x174] sm:$0xf] }
  0x97   : > { %1094 = vmatpush.bf16.msra.mxu0 %v3110_v5  ;;  %v3811_v5 = vld [vmem:[#allocation7 + $0x34] sm:$0xf]  ;;  %v3026_v10 = vor.u32 %v3827_v56, %v3023_v57  ;;  %v3176_v57 = vor.u32 %v3865_v49, %v3175_v45  ;;  %v3155_v45 = vld [vmem:[#allocation7 + $0x38] sm:$0xf] }
  0x98   : > { %1131 = vmatpush.bf16.msrb.mxu1 %v3066_v1  ;;  %1073 = vmatmul.bf16.vlgmr.msra.gmra.mxu3 %v4468_v58  ;;  %v1063_v1 = vand.u32 %v1008_v54, %v4455_v17  ;;  %v3880_v54 = vld [vmem:[#allocation7 + $0x368] sm:$0xf0] }
  0x99   : > { %1117 = vmatpush.bf16.msrb.mxu3 %v3010_v2  ;;  %v3843_v2 = vld [vmem:[#allocation7 + $0x2b4] sm:$0xf]  ;;  %v3236_v62 = vor.u32 %v3880_v54, %v3235_v51  ;;  %v3931_v51 = vld [vmem:[#allocation7 + $0x3a8] sm:$0xf0] }
  0x9a   : > { %1144 = vmatpush.bf16.msrb.mxu2 %v3130_v9  ;;  %v3211_v9 = vld [vmem:[#allocation7 + $0x268] sm:$0xf]  ;;  %v3090_v16 = vor.u32 %v3843_v2, %v3087_v3  ;;  %v3231_v2 = vld [vmem:[#allocation7 + $0x330] sm:$0xf]  ;;  %v3879_v3 = vld [vmem:[#allocation7 + $0x340] sm:$0xf0] }
  0x9b   : > { %1095 = vmatpush.bf16.msra.mxu0 %v3102_v19  ;;  %3147 = vmatmul.msk.bf16.vlgmr.msra.gmra.mxu1 %vm625_vm1, %v4459_v20  ;;  %v3882_v19 = vld [vmem:[#allocation7 + $0x3b8] sm:$0xf0]  ;;  %v3212_v25 = vor.u32 %v3874_v12, %v3211_v9  ;;  %v3292_v12 = vld [vmem:[#allocation7 + $0xc8] sm:$0xf] }
  0x9c   : > { %1132 = vmatpush.bf16.msrb.mxu1 %v3058_v14  ;;  %v3015_v14 = vld [vmem:[#allocation7 + $0x15c] sm:$0xf0]  ;;  %v3244_v30 = vor.u32 %v3882_v19, %v3243_v18 }
  0x9d   : > { %1118 = vmatpush.bf16.msrb.mxu3 %v3002_v15  ;;  %v2959_v15 = vld [vmem:[#allocation7 + $0x44] sm:$0xf0]  ;;  %v3018_v26 = vor.u32 %v3825_v13, %v3015_v14  ;;  %v3895_v13 = vld [vmem:[#allocation7 + $0xd8] sm:$0xf0]  ;;  %v3863_v14 = vld [vmem:[#allocation7 + $0xc0] sm:$0xf0] }
  0x9e   : > { %1145 = vmatpush.bf16.msrb.mxu2 %v3122_v23  ;;  %v3079_v23 = vld [vmem:[#allocation7 + $0x29c] sm:$0xf0]  ;;  %v2962_v27 = vor.u32 %v3811_v5, %v2959_v15  ;;  %v3195_v5 = vld [vmem:[#allocation7 + $0x1c8] sm:$0xf] }
  0x9f   : > { %1096 = vmatpush.bf16.msra.mxu0 %v3094_v32  ;;  %v2951_v32 = vld [vmem:[#allocation7 + $0x1c] sm:$0xf0]  ;;  %v3082_v33 = vor.u32 %v3841_v22, %v3079_v23  ;;  %v3227_v15 = vld [vmem:[#allocation7 + $0x308] sm:$0xf]  ;;  %v3196_v18 = vor.u32 %v3870_v6, %v3195_v5  ;;  %v3293_v22 = vor.u32 %v3895_v13, %v3292_v12  ;;  %v3887_v6 = vld [vmem:[#allocation7 + $0x38] sm:$0xf0] }
  0xa0   : > { %1133 = vmatpush.bf16.msrb.mxu1 %v3050_v28  ;;  %v3207_v28 = vld [vmem:[#allocation7 + $0x240] sm:$0xf]  ;;  %v3260_v5 = vld [vmem:[#allocation7 + $0x28] sm:$0xf]  ;;  %v3933_v13 = vld [vmem:[#allocation7 + $0x3d0] sm:$0xf0] }
  0xa1   : > { %1119 = vmatpush.bf16.msrb.mxu3 %v2994_v29  ;;  %v3873_v29 = vld [vmem:[#allocation7 + $0x250] sm:$0xf0]  ;;  %v3191_v19 = vld [vmem:[#allocation7 + $0x1a0] sm:$0xf] }
  0xa2   : > { %1146 = vmatpush.bf16.msrb.mxu2 %v3114_v34  ;;  %v3866_v34 = vld [vmem:[#allocation7 + $0x138] sm:$0xf0]  ;;  %v3208_v38 = vor.u32 %v3873_v29, %v3207_v28  ;;  %v3223_v29 = vld [vmem:[#allocation7 + $0x2e0] sm:$0xf] }
  0xa3   : > { %1097 = vmatpush.bf16.msra.mxu0 %v3086_v44  ;;  %v3180_v44 = vor.u32 %v3866_v34, %v3179_v8  ;;  %v3862_v28 = vld [vmem:[#allocation7 + $0x98] sm:$0xf0]  ;;  %v3187_v8 = vld [vmem:[#allocation7 + $0x178] sm:$0xf]  ;;  %v3444_v12 = vld [vmem:[#allocation7 + $0x3c0] sm:$0xf] }
  0xa4   : > { %1134 = vmatpush.bf16.msrb.mxu1 %v3042_v40  ;;  %v3883_v40 = vld [vmem:[#allocation7 + $0x3e0] sm:$0xf0] }
  0xa5   : > { %1120 = vmatpush.bf16.msrb.mxu3 %v2986_v41  ;;  %v2954_v41 = vor.u32 %v3809_v31, %v2951_v32  ;;  %v3248_v50 = vor.u32 %v3883_v40, %v3247_v39  ;;  %v4499_v32 = vld [vmem:[#allocation7 + $0x3e8] sm:$0x11]  ;;  %v3861_v40 = vld [vmem:[#allocation7 + $0x70] sm:$0xf0] }
  0xa6   : > { %1147 = vmatpush.bf16.msrb.mxu2 %v3106_v47  ;;  %v3308_v47 = vld [vmem:[#allocation7 + $0x118] sm:$0xf]  ;;  %v3891_v39 = vld [vmem:[#allocation7 + $0x88] sm:$0xf0] }
  0xa7   : > { %1098 = vmatpush.bf16.msra.mxu0 %v3078_v60  ;;  %v3309_v56 = vor.u32 %v3899_v48, %v3308_v47  ;;  %v3171_v60 = vld [vmem:[#allocation7 + $0xd8] sm:$0xf]  ;;  %v3867_v47 = vld [vmem:[#allocation7 + $0x160] sm:$0xf0] }
  0xa8   : > { %1135 = vmatpush.bf16.msrb.mxu1 %v3034_v52  ;;  %v3204_v52 = vor.u32 %v3872_v43, %v3203_v42  ;;  %v3876_v42 = vld [vmem:[#allocation7 + $0x2c8] sm:$0xf0]  ;;  %v1661_v43 = vunpack.c.l.b16 %v4499_v32  ;;  %v3436_v48 = vld [vmem:[#allocation7 + $0x398] sm:$0xf] }
  0xa9   : > { %1121 = vmatpush.bf16.msrb.mxu3 %v2978_v55  ;;  %v3871_v55 = vld [vmem:[#allocation7 + $0x200] sm:$0xf0] }
  0xaa   : > { %1148 = vmatpush.bf16.msrb.mxu2 %v3098_v0  ;;  %1099 = vmatmul.bf16.vlgmr.msra.gmra.mxu0 %v4472_v61  ;;  %v3897_v0 = vld [vmem:[#allocation7 + $0x100] sm:$0xf0]  ;;  %v3200_v4 = vor.u32 %v3871_v55, %v3199_v53  ;;  %v3860_v55 = vld [vmem:[#allocation7 + $0x48] sm:$0xf0] }
  0xab   : > { %1162 = vmatpush.bf16.msrb.mxu0 %v1063_v1  ;;  %v3864_v1 = vld [vmem:[#allocation7 + $0xe8] sm:$0xf0]  ;;  %v3301_v7 = vor.u32 %v3897_v0, %v3300_v63  ;;  %v3889_v53 = vld [vmem:[#allocation7 + $0x60] sm:$0xf0]  ;;  %v3437_v63 = vor.u32 %v3931_v51, %v3436_v48  ;;  %v3428_v0 = vld [vmem:[#allocation7 + $0x370] sm:$0xf] }
  0xac   : > { %1136 = vmatpush.bf16.msrb.mxu1 %v3026_v10  ;;  %v3172_v9 = vor.u32 %v3864_v1, %v3171_v60  ;;  %v3167_v10 = vld [vmem:[#allocation7 + $0xb0] sm:$0xf]  ;;  %v1713_v60 = vpack.c.b16 %v1661_v43, %v1661_v43  ;;  %v3912_v43 = vld [vmem:[#allocation7 + $0x234] sm:$0xf]  ;;  %v3404_v48 = vld [vmem:[#allocation7 + $0x2f8] sm:$0xf] }
  0xad   : > { %1122 = vmatpush.bf16.msrb.mxu3 %v2970_v11  ;;  %v3232_v11 = vor.u32 %v3879_v3, %v3231_v2  ;;  %v3168_v23 = vor.u32 %v3863_v14, %v3167_v10  ;;  %v3156_v2 = vor.u32 %v3860_v55, %v3155_v45  ;;  %v3929_v3 = vld [vmem:[#allocation7 + $0x380] sm:$0xf0]  ;;  %v3372_v10 = vld [vmem:[#allocation7 + $0x258] sm:$0xf]  ;;  %v3348_v51 = vld [vmem:[#allocation7 + $0x1e0] sm:$0xf] }
  0xae   : > { %1149 = vmatpush.bf16.msrb.mxu2 %v3090_v16  ;;  %v3878_v16 = vld [vmem:[#allocation7 + $0x318] sm:$0xf0]  ;;  %v3429_v14 = vor.u32 %v3929_v3, %v3428_v0  ;;  %v3910_v55 = vld [vmem:[#allocation7 + $0x20c] sm:$0xf] }
  0xaf   : > { %1163 = vmatpush.bf16.msrb.mxu0 %v3146_v21  ;;  %v3869_v21 = vld [vmem:[#allocation7 + $0x1b0] sm:$0xf0]  ;;  %v1454_v3 = vld [vmem:[%s4441_s7 + $0x18] sm:$0xff] }
  0xb0   : > { %1137 = vmatpush.bf16.msrb.mxu1 %v3018_v26  ;;  %v3284_v26 = vld [vmem:[#allocation7 + $0xa0] sm:$0xf]  ;;  %v3192_v31 = vor.u32 %v3869_v21, %v3191_v19  ;;  %v3420_v21 = vld [vmem:[#allocation7 + $0x348] sm:$0xf] }
  0xb1   : > { %1123 = vmatpush.bf16.msrb.mxu3 %v2962_v27  ;;  %v3893_v27 = vld [vmem:[#allocation7 + $0xb0] sm:$0xf0] }
  0xb2   : > { %1150 = vmatpush.bf16.msrb.mxu2 %v3082_v33  ;;  %v3868_v33 = vld [vmem:[#allocation7 + $0x188] sm:$0xf0]  ;;  %v3285_v34 = vor.u32 %v3893_v27, %v3284_v26  ;;  %v3252_v26 = vld [vmem:[#allocation7] sm:$0xf]  ;;  %v3885_v27 = vld [vmem:[#allocation7 + $0x10] sm:$0xf0] }
  0xb3   : > { %1396 = vmatpush.bf16.msra.mxu0 %v3212_v25  ;;  %1138 = vmatmul.bf16.vlgmr.msrb.gmra.mxu1 %v4470_v59  ;;  %v3228_v25 = vor.u32 %v3878_v16, %v3227_v15  ;;  %v3261_v15 = vor.u32 %v3887_v6, %v3260_v5  ;;  %v3898_v16 = vld [vmem:[#allocation7 + $0x11c] sm:$0xf]  ;;  %v3908_v6 = vld [vmem:[#allocation7 + $0x1e4] sm:$0xf] }
  0xb4   : > { %1409 = vmatpush.bf16.msra.mxu1 %v3244_v30  ;;  %v3877_v30 = vld [vmem:[#allocation7 + $0x2f0] sm:$0xf0] }
  0xb5   : > { %1124 = vmatpush.bf16.msrb.mxu3 %v2954_v41  ;;  %1151 = vmatmul.bf16.vlgmr.msrb.gmra.mxu2 %v4472_v61  ;;  %v3224_v37 = vor.u32 %v3877_v30, %v3223_v29  ;;  %v3219_v41 = vld [vmem:[#allocation7 + $0x2b8] sm:$0xf]  ;;  %v3914_v30 = vld [vmem:[#allocation7 + $0x25c] sm:$0xf] }
  0xb6   : > { %1428 = vmatpush.bf16.msra.mxu2 %v1381_v35  ;;  %v3164_v35 = vor.u32 %v3862_v28, %v3163_v24  ;;  %v3220_v54 = vor.u32 %v3876_v42, %v3219_v41  ;;  %v3364_v24 = vld [vmem:[#allocation7 + $0x230] sm:$0xf]  ;;  %v3913_v28 = vld [vmem:[#allocation7 + $0x240] sm:$0xf0]  ;;  %v3911_v41 = vld [vmem:[#allocation7 + $0x218] sm:$0xf0] }
  0xb7   : > { %1397 = vmatpush.bf16.msra.mxu0 %v3208_v38  ;;  %v3276_v38 = vld [vmem:[#allocation7 + $0x78] sm:$0xf] }
  0xb8   : > { %1410 = vmatpush.bf16.msra.mxu1 %v3240_v46  ;;  %1125 = vmatmul.bf16.vlgmr.msrb.gmra.mxu3 %v4468_v58  ;;  %v3183_v46 = vld [vmem:[#allocation7 + $0x150] sm:$0xf]  ;;  %v3277_v49 = vor.u32 %v3891_v39, %v3276_v38  ;;  %v3365_v38 = vor.u32 %v3913_v28, %v3364_v24  ;;  %v3356_v39 = vld [vmem:[#allocation7 + $0x208] sm:$0xf]  ;;  %v3917_v28 = vld [vmem:[#allocation7 + $0x290] sm:$0xf0] }
  0xb9   : > { %1383 = vmatpush.bf16.msra.mxu3 %v3180_v44  ;;  %v3188_v44 = vor.u32 %v3868_v33, %v3187_v8  ;;  %v3896_v33 = vld [vmem:[#allocation7 + $0xf4] sm:$0xf] }
  0xba   : > { %1429 = vmatpush.bf16.msra.mxu2 %v3248_v50  ;;  %3148 = vmatmul.msk.bf16.vlgmr.msrb.gmra.mxu0 %vm625_vm1, %v4459_v20  ;;  %v3160_v50 = vor.u32 %v3861_v40, %v3159_v36  ;;  %v3925_v36 = vld [vmem:[#allocation7 + $0x330] sm:$0xf0] }
  0xbb   : > { %1398 = vmatpush.bf16.msra.mxu0 %v3204_v52  ;;  %v3268_v52 = vld [vmem:[#allocation7 + $0x50] sm:$0xf] }
  0xbc   : > { %1411 = vmatpush.bf16.msra.mxu1 %v3236_v62  ;;  %v3184_v62 = vor.u32 %v3867_v47, %v3183_v46  ;;  %v3269_v1 = vor.u32 %v3889_v53, %v3268_v52  ;;  %v3894_v46 = vld [vmem:[#allocation7 + $0xcc] sm:$0xf]  ;;  %v3909_v52 = vld [vmem:[#allocation7 + $0x1f0] sm:$0xf0] }
  0xbd   : > { %1384 = vmatpush.bf16.msra.mxu3 %v3176_v57  ;;  %v3875_v57 = vld [vmem:[#allocation7 + $0x2a0] sm:$0xf0]  ;;  %v3349_v0 = vor.u32 %v3909_v52, %v3348_v51  ;;  %v3438_v51 = vld [vmem:[#allocation7 + $0x3ac] sm:$0xf0]  ;;  %v3326_v52 = vld [vmem:[#allocation7 + $0x17c] sm:$0xf0] }
  0xbe   : > { %1774 = vmatpush.bf16.msrb.mxu2 %v3309_v56  ;;  %v3215_v56 = vld [vmem:[#allocation7 + $0x290] sm:$0xf] }
  0xbf   : > { %1399 = vmatpush.bf16.msra.mxu0 %v3200_v4  ;;  %v3216_v4 = vor.u32 %v3875_v57, %v3215_v56  ;;  %v3892_v57 = vld [vmem:[#allocation7 + $0xa4] sm:$0xf] }
  0xc0   : > { %1412 = vmatpush.bf16.msra.mxu1 %v3232_v11  ;;  %v3915_v11 = vld [vmem:[#allocation7 + $0x268] sm:$0xf0] }
  0xc1   : > { %1385 = vmatpush.bf16.msra.mxu3 %v3172_v9  ;;  %v3859_v9 = vld [vmem:[#allocation7 + $0x20] sm:$0xf0] }
  0xc2   : > { %1775 = vmatpush.bf16.msrb.mxu2 %v3301_v7  ;;  %v3151_v7 = vld [vmem:[#allocation7 + $0x10] sm:$0xf] }
  0xc3   : > { %1400 = vmatpush.bf16.msra.mxu0 %v3196_v18  ;;  %v3310_v18 = vld [vmem:[#allocation7 + $0x12c] sm:$0xf0]  ;;  %v3152_v19 = vor.u32 %v3859_v9, %v3151_v7  ;;  %v3350_v7 = vld [vmem:[#allocation7 + $0x1f4] sm:$0xf0] }
  0xc4   : > { %1413 = vmatpush.bf16.msra.mxu1 %v3228_v25  ;;  %v3445_v25 = vor.u32 %v3933_v13, %v3444_v12  ;;  %v3313_v29 = vor.u32 %v3898_v16, %v3310_v18  ;;  %v3919_v12 = vld [vmem:[#allocation7 + $0x2b8] sm:$0xf0]  ;;  %v1662_v13 = vunpack.c.h.b16 %v4499_v32  ;;  %v3332_v16 = vld [vmem:[#allocation7 + $0x190] sm:$0xf]  ;;  %v3353_v18 = vor.u32 %v3908_v6, %v3350_v7  ;;  %v3430_v6 = vld [vmem:[#allocation7 + $0x384] sm:$0xf0] }
  0xc5   : > { %1386 = vmatpush.bf16.msra.mxu3 %v3168_v23  ;;  %3249 = vmatmul.msk.bf16.vlgmr.msra.gmra.mxu2 %vm625_vm1, %v4459_v20  ;;  %v1769_v20 = vand.u32 %v1713_v60, %v4455_v17  ;;  %v3373_v23 = vor.u32 %v3915_v11, %v3372_v10  ;;  %v3286_v60 = vld [vmem:[#allocation7 + $0xb4] sm:$0xf0]  ;;  %v3890_v10 = vld [vmem:[#allocation7 + $0x7c] sm:$0xf]  ;;  %v3388_v11 = vld [vmem:[#allocation7 + $0x2a8] sm:$0xf] }
  0xc6   : > { %1776 = vmatpush.bf16.msrb.mxu2 %v3293_v22  ;;  %v3927_v22 = vld [vmem:[#allocation7 + $0x358] sm:$0xf0]  ;;  %v3289_v5 = vor.u32 %v3892_v57, %v3286_v60  ;;  %v3389_v24 = vor.u32 %v3919_v12, %v3388_v11  ;;  %v1714_v32 = vpack.c.b16 %v1662_v13, %v1662_v13  ;;  %v1452_v57 = vld [vmem:[%s4441_s7 + $0x8] sm:$0xff]  ;;  %v3638_v12 = vld [vmem:[#allocation7 + $0x3a0] sm:$0xf] }
  0xc7   : > { %1401 = vmatpush.bf16.msra.mxu0 %v3192_v31  ;;  %v3374_v31 = vld [vmem:[#allocation7 + $0x26c] sm:$0xf0]  ;;  %v3421_v8 = vor.u32 %v3927_v22, %v3420_v21  ;;  %v3906_v22 = vld [vmem:[#allocation7 + $0x1bc] sm:$0xf]  ;;  %v3981_v13 = vld [vmem:[#allocation7 + $0x3b0] sm:$0xf0] }
  0xc8   : > { %1414 = vmatpush.bf16.msra.mxu1 %v3224_v37  ;;  %v1451_v37 = vld [vmem:[%s4441_s7] sm:$0xff]  ;;  %v3377_v40 = vor.u32 %v3914_v30, %v3374_v31  ;;  %v3324_v30 = vld [vmem:[#allocation7 + $0x168] sm:$0xf] }
  0xc9   : > { %1387 = vmatpush.bf16.msra.mxu3 %v3164_v35  ;;  %v3412_v35 = vld [vmem:[#allocation7 + $0x320] sm:$0xf]  ;;  %v4509_v47 = vpack.c.bf16 %v1451_v37, %v1451_v37  ;;  %v3886_v37 = vld [vmem:[#allocation7 + $0x2c] sm:$0xf] }
  0xca   : > { %1777 = vmatpush.bf16.msrb.mxu2 %v3285_v34  ;;  %v3302_v34 = vld [vmem:[#allocation7 + $0x104] sm:$0xf0]  ;;  %v3413_v45 = vor.u32 %v3925_v36, %v3412_v35 }
  0xcb   : > { %1402 = vmatpush.bf16.msra.mxu0 %v3188_v44  ;;  %v3305_v42 = vor.u32 %v3896_v33, %v3302_v34  ;;  %v3366_v44 = vld [vmem:[#allocation7 + $0x244] sm:$0xf0]  ;;  %v3904_v34 = vld [vmem:[#allocation7 + $0x194] sm:$0xf] }
  0xcc   : > { %1415 = vmatpush.bf16.msra.mxu1 %v3220_v54  ;;  %v3369_v54 = vor.u32 %v3912_v43, %v3366_v44  ;;  %v3334_v35 = vld [vmem:[#allocation7 + $0x1a4] sm:$0xf0]  ;;  %v3932_v43 = vld [vmem:[#allocation7 + $0x3c4] sm:$0xf]  ;;  %v3446_v44 = vld [vmem:[#allocation7 + $0x3d4] sm:$0xf0] }
  0xcd   : > { %1388 = vmatpush.bf16.msra.mxu3 %v3160_v50  ;;  %v3357_v50 = vor.u32 %v3911_v41, %v3356_v39  ;;  %v3316_v39 = vld [vmem:[#allocation7 + $0x140] sm:$0xf] }
  0xce   : > { %1778 = vmatpush.bf16.msrb.mxu2 %v3277_v49  ;;  %v3923_v49 = vld [vmem:[#allocation7 + $0x308] sm:$0xf0] }
  0xcf   : > { %1403 = vmatpush.bf16.msra.mxu0 %v3184_v62  ;;  %v3405_v56 = vor.u32 %v3923_v49, %v3404_v48  ;;  %v3396_v62 = vld [vmem:[#allocation7 + $0x2d0] sm:$0xf]  ;;  %v3510_v48 = vld [vmem:[#allocation7 + $0x120] sm:$0xf]  ;;  %v3949_v49 = vld [vmem:[#allocation7 + $0x130] sm:$0xf0] }
  0xd0   : > { %1416 = vmatpush.bf16.msra.mxu1 %v3216_v4  ;;  %v3907_v4 = vld [vmem:[#allocation7 + $0x1c8] sm:$0xf0]  ;;  %v3511_v60 = vor.u32 %v3949_v49, %v3510_v48 }
  0xd1   : > { %1389 = vmatpush.bf16.msra.mxu3 %v3156_v2 }
  0xd2   : > { %1779 = vmatpush.bf16.msrb.mxu2 %v3269_v1  ;;  %1404 = vmatmul.bf16.vlgmr.msra.gmra.mxu0 %v4470_v59  ;;  %v3253_v59 = vor.u32 %v3885_v27, %v3252_v26  ;;  %v3340_v1 = vld [vmem:[#allocation7 + $0x1b8] sm:$0xf]  ;;  %v3270_v26 = vld [vmem:[#allocation7 + $0x64] sm:$0xf0]  ;;  %v3380_v27 = vld [vmem:[#allocation7 + $0x280] sm:$0xf] }
  0xd3   : > { %1800 = vmatpush.bf16.msrb.mxu0 %v3437_v63  ;;  %1417 = vmatmul.bf16.vlgmr.msra.gmra.mxu1 %v4472_v61  ;;  %v3294_v61 = vld [vmem:[#allocation7 + $0xdc] sm:$0xf0]  ;;  %v3921_v63 = vld [vmem:[#allocation7 + $0x2e0] sm:$0xf0]  ;;  %v3381_v36 = vor.u32 %v3917_v28, %v3380_v27  ;;  %v3639_v28 = vor.u32 %v3981_v13, %v3638_v12  ;;  %v4536_v12 = vld [vmem:[#allocation7 + $0x3f0] sm:$0x11] }
  0xd4   : > { %1819 = vmatpush.bf16.msrb.mxu1 %v1769_v20  ;;  %v3297_v53 = vor.u32 %v3894_v46, %v3294_v61  ;;  %v3397_v9 = vor.u32 %v3921_v63, %v3396_v62  ;;  %v3278_v20 = vld [vmem:[#allocation7 + $0x8c] sm:$0xf0]  ;;  %v3930_v46 = vld [vmem:[#allocation7 + $0x39c] sm:$0xf]  ;;  %v3574_v62 = vld [vmem:[#allocation7 + $0x260] sm:$0xf] }
  0xd5   : > { %1390 = vmatpush.bf16.msra.mxu3 %v3152_v19  ;;  %v3905_v19 = vld [vmem:[#allocation7 + $0x1a0] sm:$0xf0]  ;;  %v3281_v21 = vor.u32 %v3890_v10, %v3278_v20  ;;  %v3965_v63 = vld [vmem:[#allocation7 + $0x270] sm:$0xf0]  ;;  %v3318_v10 = vld [vmem:[#allocation7 + $0x154] sm:$0xf0]  ;;  %v4526_v20 = vpack.c.bf16 %v1452_v57, %v1452_v57 }
  0xd6   : > { %1780 = vmatpush.bf16.msrb.mxu2 %v3261_v15  ;;  %v3341_v15 = vor.u32 %v3907_v4, %v3340_v1  ;;  %v3928_v1 = vld [vmem:[#allocation7 + $0x374] sm:$0xf]  ;;  %v3502_v4 = vld [vmem:[#allocation7 + $0xf8] sm:$0xf]  ;;  %v3575_v11 = vor.u32 %v3965_v63, %v3574_v62  ;;  %v3975_v62 = vld [vmem:[#allocation7 + $0x338] sm:$0xf0] }
  0xd7   : > { %1801 = vmatpush.bf16.msrb.mxu0 %v3429_v14  ;;  %v4514_v14 = vpack.c.bf16 %v1454_v3, %v1454_v3  ;;  %v3973_v13 = vld [vmem:[#allocation7 + $0x310] sm:$0xf0] }
  0xd8   : > { %1820 = vmatpush.bf16.msrb.mxu1 %v3445_v25  ;;  %1391 = vmatmul.bf16.vlgmr.msra.gmra.mxu3 %v4468_v58  ;;  %v3358_v58 = vld [vmem:[#allocation7 + $0x21c] sm:$0xf0]  ;;  %v3888_v25 = vld [vmem:[#allocation7 + $0x54] sm:$0xf] }
  0xd9   : > { %1787 = vmatpush.bf16.msrb.mxu3 %v3373_v23  ;;  %v3361_v2 = vor.u32 %v3910_v55, %v3358_v58  ;;  %v3342_v23 = vld [vmem:[#allocation7 + $0x1cc] sm:$0xf0]  ;;  %v3273_v33 = vor.u32 %v3888_v25, %v3270_v26  ;;  %v3884_v55 = vld [vmem:[#allocation7 + $0x4] sm:$0xf]  ;;  %v3254_v58 = vld [vmem:[#allocation7 + $0x14] sm:$0xf0] }
  0xda   : > { %1781 = vmatpush.bf16.msrb.mxu2 %v3253_v59  ;;  %v3345_v31 = vor.u32 %v3906_v22, %v3342_v23  ;;  %v1453_v59 = vld [vmem:[%s4441_s7 + $0x10] sm:$0xff]  ;;  %v3257_v7 = vor.u32 %v3884_v55, %v3254_v58  ;;  %v3945_v23 = vld [vmem:[#allocation7 + $0xe0] sm:$0xf0]  ;;  %v3422_v25 = vld [vmem:[#allocation7 + $0x35c] sm:$0xf0] }
  0xdb   : > { %1802 = vmatpush.bf16.msrb.mxu0 %v3421_v8  ;;  %v3903_v8 = vld [vmem:[#allocation7 + $0x178] sm:$0xf0]  ;;  %v4520_v61 = vpack.c.bf16 %v1453_v59, %v1453_v59  ;;  %v3494_v22 = vld [vmem:[#allocation7 + $0xd0] sm:$0xf]  ;;  %v3486_v59 = vld [vmem:[#allocation7 + $0xa8] sm:$0xf] }
  0xdc   : > { %1826 = vmatpush.bf16.msra.mxu1 %v3313_v29  ;;  %v3333_v29 = vor.u32 %v3905_v19, %v3332_v16  ;;  %v3325_v41 = vor.u32 %v3903_v8, %v3324_v30  ;;  %v3566_v16 = vld [vmem:[#allocation7 + $0x238] sm:$0xf]  ;;  %v3433_v19 = vor.u32 %v3928_v1, %v3430_v6  ;;  %v3495_v8 = vor.u32 %v3945_v23, %v3494_v22  ;;  %v3542_v1 = vld [vmem:[#allocation7 + $0x1c0] sm:$0xf]  ;;  %v3939_v6 = vld [vmem:[#allocation7 + $0x68] sm:$0xf0] }
  0xdd   : > { %1788 = vmatpush.bf16.msrb.mxu3 %v3365_v38  ;;  %1782 = vmatmul.bf16.vlgmr.msrb.gmra.mxu2 %v4509_v47  ;;  %v3262_v38 = vld [vmem:[#allocation7 + $0x3c] sm:$0xf0]  ;;  %v3630_v30 = vld [vmem:[#allocation7 + $0x378] sm:$0xf]  ;;  %v3462_v22 = vld [vmem:[#allocation7 + $0x30] sm:$0xf] }
  0xde   : > { %1839 = vmatpush.bf16.msra.mxu2 %v3377_v40  ;;  %v1772_v40 = vand.u32 %v1714_v32, %v4455_v17  ;;  %v3937_v23 = vld [vmem:[#allocation7 + $0x40] sm:$0xf0] }
  0xdf   : > { %1803 = vmatpush.bf16.msrb.mxu0 %v3413_v45  ;;  %v3337_v45 = vor.u32 %v3904_v34, %v3334_v35  ;;  %v3961_v34 = vld [vmem:[#allocation7 + $0x220] sm:$0xf0] }
  0xe0   : > { %1827 = vmatpush.bf16.msra.mxu1 %v3305_v42  ;;  %v3901_v42 = vld [vmem:[#allocation7 + $0x150] sm:$0xf0] }
  0xe1   : > { %1789 = vmatpush.bf16.msrb.mxu3 %v3357_v50  ;;  %v3265_v50 = vor.u32 %v3886_v37, %v3262_v38  ;;  %v3943_v37 = vld [vmem:[#allocation7 + $0xb8] sm:$0xf0]  ;;  %v3924_v38 = vld [vmem:[#allocation7 + $0x324] sm:$0xf] }
  0xe2   : > { %1840 = vmatpush.bf16.msra.mxu2 %v3369_v54  ;;  %v3902_v54 = vld [vmem:[#allocation7 + $0x16c] sm:$0xf] }
  0xe3   : > { %1804 = vmatpush.bf16.msrb.mxu0 %v3405_v56  ;;  %3450 = vmatmul.msk.bf16.vlgmr.msrb.gmra.mxu1 %vm625_vm1, %v4514_v14  ;;  %v3317_v56 = vor.u32 %v3901_v42, %v3316_v39  ;;  %v3329_v3 = vor.u32 %v3902_v54, %v3326_v52  ;;  %v3414_v39 = vld [vmem:[#allocation7 + $0x334] sm:$0xf0]  ;;  %v3622_v42 = vld [vmem:[#allocation7 + $0x350] sm:$0xf]  ;;  %v3922_v52 = vld [vmem:[#allocation7 + $0x2fc] sm:$0xf] }
  0xe4   : > { %1828 = vmatpush.bf16.msra.mxu1 %v3297_v53  ;;  %v3449_v53 = vor.u32 %v3932_v43, %v3446_v44  ;;  %v3977_v43 = vld [vmem:[#allocation7 + $0x360] sm:$0xf0]  ;;  %v3487_v44 = vor.u32 %v3943_v37, %v3486_v59  ;;  %v3417_v48 = vor.u32 %v3924_v38, %v3414_v39  ;;  %v3935_v59 = vld [vmem:[#allocation7 + $0x18] sm:$0xf0]  ;;  %v309_v37 = vlaneseq  ;;  %v3382_v38 = vld [vmem:[#allocation7 + $0x294] sm:$0xf0] }
  0xe5   : > { %1790 = vmatpush.bf16.msrb.mxu3 %v3349_v0  ;;  %v3441_v0 = vor.u32 %v3930_v46, %v3438_v51  ;;  %v3959_v46 = vld [vmem:[#allocation7 + $0x1f8] sm:$0xf0]  ;;  %v3941_v51 = vld [vmem:[#allocation7 + $0x90] sm:$0xf0]  ;;  %v3623_v55 = vor.u32 %v3977_v43, %v3622_v42  ;;  %v3576_v42 = vld [vmem:[#allocation7 + $0x274] sm:$0xf0] }
  0xe6   : > { %1841 = vmatpush.bf16.msra.mxu2 %v3361_v2  ;;  %v4524_v2 = vpop.f32.mrf.mxu3 }
  0xe7   : > { %1805 = vmatpush.bf16.msrb.mxu0 %v3397_v9  ;;  %v3900_v9 = vld [vmem:[#allocation7 + $0x144] sm:$0xf]  ;;  %v647_v26 = vpop.f32.mrf.mxu0 }
  0xe8   : > { %1829 = vmatpush.bf16.msra.mxu1 %v3289_v5  ;;  %v3947_v5 = vld [vmem:[#allocation7 + $0x108] sm:$0xf0]  ;;  %v660_v27 = vpop.f32.mrf.mxu1 }
  0xe9   : > { %1791 = vmatpush.bf16.msrb.mxu3 %v3341_v15  ;;  %v3503_v15 = vor.u32 %v3947_v5, %v3502_v4  ;;  %v661_v32 = vadd.f32 %v660_v27, %v647_v26  ;;  %v3470_v5 = vld [vmem:[#allocation7 + $0x58] sm:$0xf]  ;;  %v2085_v26 = vunpack.c.l.b16 %v4536_v12 }
  0xea   : > { %1842 = vmatpush.bf16.msra.mxu2 %v3353_v18  ;;  %v3963_v18 = vld [vmem:[#allocation7 + $0x248] sm:$0xf0] }
  0xeb   : > { %1806 = vmatpush.bf16.msrb.mxu0 %v3389_v24  ;;  %v3926_v24 = vld [vmem:[#allocation7 + $0x34c] sm:$0xf]  ;;  %v2137_v39 = vpack.c.b16 %v2085_v26, %v2085_v26  ;;  %v3504_v26 = vld [vmem:[#allocation7 + $0x10c] sm:$0xf0] }
  0xec   : > { %1830 = vmatpush.bf16.msra.mxu1 %v3281_v21  ;;  %v3321_v21 = vor.u32 %v3900_v9, %v3318_v10  ;;  %v3425_v35 = vor.u32 %v3926_v24, %v3422_v25  ;;  %v3398_v9 = vld [vmem:[#allocation7 + $0x2e4] sm:$0xf0]  ;;  %v3918_v24 = vld [vmem:[#allocation7 + $0x2ac] sm:$0xf]  ;;  %v3390_v25 = vld [vmem:[#allocation7 + $0x2bc] sm:$0xf0] }
  0xed   : > { %1792 = vmatpush.bf16.msrb.mxu3 %v3333_v29  ;;  %v3567_v29 = vor.u32 %v3963_v18, %v3566_v16  ;;  %v3534_v16 = vld [vmem:[#allocation7 + $0x198] sm:$0xf]  ;;  %v3955_v18 = vld [vmem:[#allocation7 + $0x1a8] sm:$0xf0] }
  0xee   : > { %1843 = vmatpush.bf16.msra.mxu2 %v3345_v31  ;;  %v3979_v31 = vld [vmem:[#allocation7 + $0x388] sm:$0xf0] }
  0xef   : > { %1807 = vmatpush.bf16.msrb.mxu0 %v3381_v36  ;;  %v688_v36 = vpop.f32.mrf.mxu3  ;;  %v649_v58 = vpop.f32.mrf.mxu0 }
  0xf0   : > { %1831 = vmatpush.bf16.msra.mxu1 %v3273_v33  ;;  %v3558_v33 = vld [vmem:[#allocation7 + $0x210] sm:$0xf]  ;;  %v673_v49 = vpop.f32.mrf.mxu2  ;;  %v3454_v36 = vld [vmem:[#allocation7 + $0x8] sm:$0xf]  ;;  %v3640_v58 = vld [vmem:[#allocation7 + $0x3b4] sm:$0xf0] }
  0xf1   : > { %1793 = vmatpush.bf16.msrb.mxu3 %v3325_v41  ;;  %v3559_v41 = vor.u32 %v3961_v34, %v3558_v33  ;;  %v674_v54 = vadd.f32 %v673_v49, %v661_v32  ;;  %v3535_v32 = vor.u32 %v3955_v18, %v3534_v16  ;;  %v3953_v33 = vld [vmem:[#allocation7 + $0x180] sm:$0xf0]  ;;  %v3393_v34 = vor.u32 %v3918_v24, %v3390_v25  ;;  %v3951_v49 = vld [vmem:[#allocation7 + $0x158] sm:$0xf0] }
  0xf2   : > { %1844 = vmatpush.bf16.msra.mxu2 %v3337_v45  ;;  %1808 = vmatmul.bf16.vlgmr.msrb.gmra.mxu0 %v4520_v61  ;;  %v3550_v45 = vld [vmem:[#allocation7 + $0x1e8] sm:$0xf]  ;;  %v3946_v25 = vld [vmem:[#allocation7 + $0xfc] sm:$0xf] }
  0xf3   : > { %1871 = vmatpush.bf16.msra.mxu0 %v1772_v40  ;;  %v3631_v40 = vor.u32 %v3979_v31, %v3630_v30  ;;  %v3551_v57 = vor.u32 %v3959_v46, %v3550_v45  ;;  %v4532_v63 = vadd.f32 %v4524_v2, %v674_v54  ;;  %v3606_v2 = vld [vmem:[#allocation7 + $0x300] sm:$0xf]  ;;  %v3971_v30 = vld [vmem:[#allocation7 + $0x2e8] sm:$0xf0]  ;;  %v3463_v31 = vor.u32 %v3937_v23, %v3462_v22  ;;  %v3969_v45 = vld [vmem:[#allocation7 + $0x2c0] sm:$0xf0] }
  0xf4   : > { %1832 = vmatpush.bf16.msra.mxu1 %v3265_v50  ;;  %v3478_v50 = vld [vmem:[#allocation7 + $0x80] sm:$0xf]  ;;  %v3607_v27 = vor.u32 %v3973_v13, %v3606_v2  ;;  %v3455_v46 = vor.u32 %v3935_v59, %v3454_v36  ;;  %v3978_v2 = vld [vmem:[#allocation7 + $0x37c] sm:$0xf]  ;;  %v3632_v13 = vld [vmem:[#allocation7 + $0x38c] sm:$0xf0] }
  0xf5   : > { %1794 = vmatpush.bf16.msrb.mxu3 %v3317_v56  ;;  %v662_v56 = vpop.f32.mrf.mxu1  ;;  %v3552_v36 = vld [vmem:[#allocation7 + $0x1fc] sm:$0xf0]  ;;  %v3684_v59 = vld [vmem:[#allocation7 + $0x128] sm:$0xf] }
  0xf6   : > { %1845 = vmatpush.bf16.msra.mxu2 %v3329_v3  ;;  %v3957_v3 = vld [vmem:[#allocation7 + $0x1d0] sm:$0xf0]  ;;  %v2190_v56 = vand.u32 %v2137_v39, %v4455_v17 }
  0xf7   : > { %1872 = vmatpush.bf16.msra.mxu0 %v3449_v53  ;;  %v3406_v53 = vld [vmem:[#allocation7 + $0x30c] sm:$0xf0] }
  0xf8   : > { %1833 = vmatpush.bf16.msra.mxu1 %v3257_v7  ;;  %1795 = vmatmul.bf16.vlgmr.msrb.gmra.mxu3 %v4526_v20  ;;  %v3409_v4 = vor.u32 %v3922_v52, %v3406_v53  ;;  %v3920_v7 = vld [vmem:[#allocation7 + $0x2d4] sm:$0xf]  ;;  %v4542_v52 = vshrl.u32 %v309_v37, 7  ;;  %v3991_v37 = vld [vmem:[#allocation7 + $0x138] sm:$0xf0] }
  0xf9   : > { %1852 = vmatpush.bf16.msra.mxu3 %v3441_v0  ;;  %v3479_v0 = vor.u32 %v3941_v51, %v3478_v50  ;;  %v2086_v50 = vunpack.c.h.b16 %v4536_v12 }
  0xfa   : > { %1846 = vmatpush.bf16.msra.mxu2 %v3321_v21  ;;  %v675_v21 = vpop.f32.mrf.mxu2  ;;  %vm743_vm2 = vcmp.ge.s32.totalorder %v4542_v52, 2  ;;  %vm748_vm3 = vcmp.ge.s32.totalorder %v4542_v52, 1  ;;  %vm1172_vm4 = vcmp.lt.s32.totalorder %v4542_v52, 7  ;;  %vm1437_vm5 = vcmp.lt.s32.totalorder %v4542_v52, 6 }
  0xfb   : > { %2195 = vmatpush.bf16.msrb.mxu0 %v3511_v60  ;;  %1834 = vmatmul.bf16.vlgmr.msra.gmra.mxu1 %v4509_v47  ;;  %v3614_v60 = vld [vmem:[#allocation7 + $0x328] sm:$0xf] }
  0xfc   : > { %2208 = vmatpush.bf16.msrb.mxu1 %v3575_v11  ;;  %v3615_v10 = vor.u32 %v3975_v62, %v3614_v60  ;;  %v3543_v11 = vor.u32 %v3957_v3, %v3542_v1  ;;  %v3962_v62 = vld [vmem:[#allocation7 + $0x23c] sm:$0xf]  ;;  %v3560_v21 = vld [vmem:[#allocation7 + $0x224] sm:$0xf0] }
  0xfd   : > { %1853 = vmatpush.bf16.msra.mxu3 %v3433_v19  ;;  %1847 = vmatmul.bf16.vlgmr.msra.gmra.mxu2 %v4526_v20  ;;  %v3401_v19 = vor.u32 %v3920_v7, %v3398_v9  ;;  %v3983_v3 = vld [vmem:[#allocation7 + $0x3d8] sm:$0xf0]  ;;  %v3948_v7 = vld [vmem:[#allocation7 + $0x124] sm:$0xf]  ;;  %v3512_v9 = vld [vmem:[#allocation7 + $0x134] sm:$0xf0] }
  0xfe   : > { %2221 = vmatpush.bf16.msrb.mxu2 %v3639_v28  ;;  %v4539_v28 = vpop.f32.mrf.mxu3  ;;  %v3515_v24 = vor.u32 %v3948_v7, %v3512_v9  ;;  %v3608_v7 = vld [vmem:[#allocation7 + $0x314] sm:$0xf0] }
  0xff   : > { %2196 = vmatpush.bf16.msrb.mxu0 %v3503_v15  ;;  %v3471_v15 = vor.u32 %v3939_v6, %v3470_v5  ;;  %v3582_v5 = vld [vmem:[#allocation7 + $0x288] sm:$0xf]  ;;  %v3967_v6 = vld [vmem:[#allocation7 + $0x298] sm:$0xf0] }
 0x100   : > { %2209 = vmatpush.bf16.msrb.mxu1 %v3567_v29  ;;  %v3598_v29 = vld [vmem:[#allocation7 + $0x2d8] sm:$0xf]  ;;  %v3583_v18 = vor.u32 %v3967_v6, %v3582_v5  ;;  %v3954_v5 = vld [vmem:[#allocation7 + $0x19c] sm:$0xf]  ;;  %v3972_v6 = vld [vmem:[#allocation7 + $0x304] sm:$0xf] }
 0x101   : > { %1854 = vmatpush.bf16.msra.mxu3 %v3425_v35  ;;  %v3916_v35 = vld [vmem:[#allocation7 + $0x284] sm:$0xf] }
 0x102   : > { %2222 = vmatpush.bf16.msrb.mxu2 %v3631_v40  ;;  %3451 = vmatmul.msk.bf16.vlgmr.msra.gmra.mxu0 %vm625_vm1, %v4514_v14  ;;  %v3599_v40 = vor.u32 %v3971_v30, %v3598_v29  ;;  %v3385_v51 = vor.u32 %v3916_v35, %v3382_v38  ;;  %v738_v53 = vpop.f32.mrf.mxu2  ;;  %v3976_v29 = vld [vmem:[#allocation7 + $0x354] sm:$0xf]  ;;  %v3648_v35 = vld [vmem:[#allocation7 + $0x3dc] sm:$0xf0]  ;;  %v742_v38 = vrot.slane %v4532_v63, 6 }
 0x103   : > { %2197 = vmatpush.bf16.msrb.mxu0 %v3495_v8  ;;  %v3526_v8 = vld [vmem:[#allocation7 + $0x170] sm:$0xf]  ;;  %v3974_v63 = vld [vmem:[#allocation7 + $0x32c] sm:$0xf] }
 0x104   : > { %2210 = vmatpush.bf16.msrb.mxu1 %v3559_v41  ;;  %v3964_v41 = vld [vmem:[#allocation7 + $0x264] sm:$0xf]  ;;  %v3527_v43 = vor.u32 %v3953_v33, %v3526_v8  ;;  %v3624_v33 = vld [vmem:[#allocation7 + $0x364] sm:$0xf0] }
 0x105   : > { %1855 = vmatpush.bf16.msra.mxu3 %v3417_v48  ;;  %v3518_v48 = vld [vmem:[#allocation7 + $0x148] sm:$0xf]  ;;  %v3579_v54 = vor.u32 %v3964_v41, %v3576_v42  ;;  %v3944_v41 = vld [vmem:[#allocation7 + $0xd4] sm:$0xf] }
 0x106   : > { %2223 = vmatpush.bf16.msrb.mxu2 %v3623_v55  ;;  %v3980_v55 = vld [vmem:[#allocation7 + $0x3a4] sm:$0xf]  ;;  %v701_v1 = vpop.f32.mrf.mxu3  ;;  %v3496_v42 = vld [vmem:[#allocation7 + $0xe4] sm:$0xf0] }
 0x107   : > { %2198 = vmatpush.bf16.msrb.mxu0 %v3487_v44  ;;  %v3590_v44 = vld [vmem:[#allocation7 + $0x2b0] sm:$0xf]  ;;  %v3488_v1 = vld [vmem:[#allocation7 + $0xbc] sm:$0xf0] }
 0x108   : > { %2211 = vmatpush.bf16.msrb.mxu1 %v3551_v57  ;;  %v3646_v57 = vld [vmem:[#allocation7 + $0x3c8] sm:$0xf]  ;;  %v3591_v60 = vor.u32 %v3969_v45, %v3590_v44  ;;  %v725_v23 = vpop.f32.mrf.mxu1  ;;  %v3627_v44 = vor.u32 %v3976_v29, %v3624_v33 }
 0x109   : > { %1856 = vmatpush.bf16.msra.mxu3 %v3409_v4  ;;  %v3519_v4 = vor.u32 %v3951_v49, %v3518_v48  ;;  %v3647_v16 = vor.u32 %v3983_v3, %v3646_v57  ;;  %v3616_v49 = vld [vmem:[#allocation7 + $0x33c] sm:$0xf0]  ;;  %v3499_v57 = vor.u32 %v3944_v41, %v3496_v42  ;;  %v3748_v41 = vld [vmem:[#allocation7 + $0x3a8] sm:$0xf]  ;;  %v4007_v42 = vld [vmem:[#allocation7 + $0x3b8] sm:$0xf0] }
 0x10a   : > { %2224 = vmatpush.bf16.msrb.mxu2 %v3615_v10  ;;  %v3643_v10 = vor.u32 %v3980_v55, %v3640_v58  ;;  %v740_v8 = vpop.f32.mrf.mxu2  ;;  %v3990_v55 = vld [vmem:[#allocation7 + $0x110] sm:$0xf0]  ;;  %v746_v58 = vsel %vm743_vm2, %v742_v38, 0.0  ;;  %v3619_v3 = vor.u32 %v3974_v63, %v3616_v49  ;;  %v3668_v38 = vld [vmem:[#allocation7 + $0x88] sm:$0xf] }
 0x10b   : > { %2199 = vmatpush.bf16.msrb.mxu0 %v3479_v0  ;;  %v3568_v0 = vld [vmem:[#allocation7 + $0x24c] sm:$0xf0] }
 0x10c   : > { %2212 = vmatpush.bf16.msrb.mxu1 %v3543_v11  ;;  %v2138_v11 = vpack.c.b16 %v2086_v50, %v2086_v50  ;;  %v3571_v12 = vor.u32 %v3962_v62, %v3568_v0  ;;  %v3685_v50 = vor.u32 %v3991_v37, %v3684_v59  ;;  %v3942_v0 = vld [vmem:[#allocation7 + $0xac] sm:$0xf]  ;;  %v3520_v37 = vld [vmem:[#allocation7 + $0x15c] sm:$0xf0] }
 0x10d   : > { %1857 = vmatpush.bf16.msra.mxu3 %v3401_v19  ;;  %v3960_v19 = vld [vmem:[#allocation7 + $0x214] sm:$0xf] }
 0x10e   : > { %2225 = vmatpush.bf16.msrb.mxu2 %v3607_v27  ;;  %v3958_v27 = vld [vmem:[#allocation7 + $0x1ec] sm:$0xf]  ;;  %v2193_v30 = vand.u32 %v2138_v11, %v4455_v17  ;;  %v3676_v11 = vld [vmem:[#allocation7 + $0xd8] sm:$0xf] }
 0x10f   : > { %2200 = vmatpush.bf16.msrb.mxu0 %v3471_v15  ;;  %v712_v15 = vpop.f32.mrf.mxu0  ;;  %v3555_v48 = vor.u32 %v3958_v27, %v3552_v36  ;;  %v3988_v27 = vld [vmem:[#allocation7 + $0xc0] sm:$0xf0]  ;;  %v3592_v36 = vld [vmem:[#allocation7 + $0x2c4] sm:$0xf0] }
 0x110   : > { %2213 = vmatpush.bf16.msrb.mxu1 %v3535_v32  ;;  %v713_v22 = vadd.f32 %v712_v15, %v4539_v28  ;;  %v3635_v32 = vor.u32 %v3978_v2, %v3632_v13  ;;  %v3563_v28 = vor.u32 %v3960_v19, %v3560_v21  ;;  %v3491_v2 = vor.u32 %v3942_v0, %v3488_v1  ;;  %v3940_v13 = vld [vmem:[#allocation7 + $0x84] sm:$0xf]  ;;  %v3480_v15 = vld [vmem:[#allocation7 + $0x94] sm:$0xf0]  ;;  %v3952_v21 = vld [vmem:[#allocation7 + $0x174] sm:$0xf] }
 0x111   : > { %1858 = vmatpush.bf16.msra.mxu3 %v3393_v34  ;;  %v3982_v34 = vld [vmem:[#allocation7 + $0x3cc] sm:$0xf]  ;;  %v3744_v1 = vld [vmem:[#allocation7 + $0x380] sm:$0xf] }
 0x112   : > { %2226 = vmatpush.bf16.msrb.mxu2 %v3599_v40  ;;  %v3507_v40 = vor.u32 %v3946_v25, %v3504_v26  ;;  %v3651_v45 = vor.u32 %v3982_v34, %v3648_v35  ;;  %v3528_v25 = vld [vmem:[#allocation7 + $0x184] sm:$0xf0]  ;;  %v3672_v26 = vld [vmem:[#allocation7 + $0xb0] sm:$0xf]  ;;  %v3950_v34 = vld [vmem:[#allocation7 + $0x14c] sm:$0xf] }
 0x113   : > { %2201 = vmatpush.bf16.msrb.mxu0 %v3463_v31  ;;  %v726_v31 = vadd.f32 %v725_v23, %v713_v22  ;;  %v3970_v22 = vld [vmem:[#allocation7 + $0x2dc] sm:$0xf]  ;;  %v3600_v23 = vld [vmem:[#allocation7 + $0x2ec] sm:$0xf0]  ;;  %v3531_v33 = vor.u32 %v3952_v21, %v3528_v25  ;;  %v3968_v35 = vld [vmem:[#allocation7 + $0x2b4] sm:$0xf]  ;;  %v3673_v59 = vor.u32 %v3988_v27, %v3672_v26  ;;  %v3523_v63 = vor.u32 %v3950_v34, %v3520_v37 }
 0x114   : > { %2214 = vmatpush.bf16.msrb.mxu1 %v3527_v43  ;;  %v3956_v43 = vld [vmem:[#allocation7 + $0x1c4] sm:$0xf]  ;;  %v3603_v8 = vor.u32 %v3970_v22, %v3600_v23  ;;  %v4005_v21 = vld [vmem:[#allocation7 + $0x368] sm:$0xf0]  ;;  %v3752_v22 = vld [vmem:[#allocation7 + $0x3d0] sm:$0xf] }
 0x115   : > { %1859 = vmatpush.bf16.msra.mxu3 %v3385_v51  ;;  %v739_v39 = vadd.f32 %v738_v53, %v726_v31  ;;  %v3544_v51 = vld [vmem:[#allocation7 + $0x1d4] sm:$0xf0]  ;;  %v3680_v53 = vld [vmem:[#allocation7 + $0x100] sm:$0xf]  ;;  %v3938_v31 = vld [vmem:[#allocation7 + $0x5c] sm:$0xf] }
 0x116   : > { %2227 = vmatpush.bf16.msrb.mxu2 %v3591_v60  ;;  %v727_v60 = vpop.f32.mrf.mxu1  ;;  %v3681_v9 = vor.u32 %v3990_v55, %v3680_v53  ;;  %v3749_v53 = vor.u32 %v4007_v42, %v3748_v41  ;;  %v3664_v55 = vld [vmem:[#allocation7 + $0x60] sm:$0xf]  ;;  %v4008_v23 = vld [vmem:[#allocation7 + $0x3e0] sm:$0xf0]  ;;  %v3998_v26 = vld [vmem:[#allocation7 + $0x250] sm:$0xf0] }
 0x117   : > { %2202 = vmatpush.bf16.msrb.mxu0 %v3455_v46  ;;  %v747_v46 = vrot.slane %v739_v39, 7  ;;  %v3987_v39 = vld [vmem:[#allocation7 + $0x98] sm:$0xf0]  ;;  %v3712_v25 = vld [vmem:[#allocation7 + $0x240] sm:$0xf]  ;;  %v3753_v27 = vor.u32 %v4008_v23, %v3752_v22 }
 0x118   : > { %2215 = vmatpush.bf16.msrb.mxu1 %v3519_v4  ;;  %1860 = vmatmul.bf16.vlgmr.msra.gmra.mxu3 %v4520_v61  ;;  %v3547_v4 = vor.u32 %v3956_v43, %v3544_v51  ;;  %v4560_v19 = vpop.f32.mrf.mxu2  ;;  %v2353_v43 = vld [vmem:[#allocation7 + $0x3f8] sm:$0x1]  ;;  %v3584_v51 = vld [vmem:[#allocation7 + $0x29c] sm:$0xf0]  ;;  %v3713_v34 = vor.u32 %v3998_v26, %v3712_v25  ;;  %v4003_v41 = vld [vmem:[#allocation7 + $0x318] sm:$0xf0] }
 0x119   : > { %2240 = vmatpush.bf16.msrb.mxu3 %v2190_v56  ;;  %v751_v56 = vsel %vm748_vm3, %v747_v46, 0.0  ;;  %v3595_v46 = vor.u32 %v3968_v35, %v3592_v36  ;;  %v3708_v35 = vld [vmem:[#allocation7 + $0x218] sm:$0xf]  ;;  %v3997_v36 = vld [vmem:[#allocation7 + $0x228] sm:$0xf0] }
 0x11a   : > { %2203 = vmatmul.bf16.vlgmr.msrb.gmra.mxu0 %v4509_v47  ;;  %2228 = vmatpush.bf16.msrb.mxu2 %v3583_v18  ;;  %v4558_v62 = vadd.f32 %v751_v56, %v746_v58  ;;  %v3986_v58 = vld [vmem:[#allocation7 + $0x70] sm:$0xf0]  ;;  %v3709_v42 = vor.u32 %v3997_v36, %v3708_v35 }
 0x11b   : > { %2260 = vmatpush.bf16.msra.mxu0 %v3579_v54  ;;  %2216 = vmatmul.bf16.vlgmr.msrb.gmra.mxu1 %v4526_v20  ;;  %v714_v54 = vpop.f32.mrf.mxu0  ;;  %v4562_v29 = vpop.f32.mrf.mxu3 }
 0x11c   : > { %2273 = vmatpush.bf16.msra.mxu1 %v3643_v10  ;;  %v3536_v10 = vld [vmem:[#allocation7 + $0x1ac] sm:$0xf0]  ;;  %v3669_v54 = vor.u32 %v3987_v39, %v3668_v38  ;;  %v1088_v25 = vadd.f32 %v4560_v19, %v4562_v29 }
 0x11d   : > { %2241 = vmatpush.bf16.msrb.mxu3 %v3647_v16  ;;  %2229 = vmatmul.bf16.vlgmr.msrb.gmra.mxu2 %v4520_v61  ;;  %v3611_v16 = vor.u32 %v3972_v6, %v3608_v7  ;;  %v3539_v18 = vor.u32 %v3954_v5, %v3536_v10  ;;  %v3456_v5 = vld [vmem:[#allocation7 + $0x1c] sm:$0xf0]  ;;  %v3716_v7 = vld [vmem:[#allocation7 + $0x268] sm:$0xf]  ;;  %v3665_v10 = vor.u32 %v3986_v58, %v3664_v55  ;;  %v3724_v58 = vld [vmem:[#allocation7 + $0x2b8] sm:$0xf] }
 0x11e   : > { %2292 = vmatpush.bf16.msra.mxu2 %v2193_v30  ;;  %v4564_v30 = vpop.f32.mrf.mxu1 }
 0x11f   : > { %2261 = vmatpush.bf16.msra.mxu0 %v3571_v12  ;;  %v3989_v12 = vld [vmem:[#allocation7 + $0xe8] sm:$0xf0] }
 0x120   : > { %2274 = vmatpush.bf16.msra.mxu1 %v3635_v32  ;;  %v3483_v32 = vor.u32 %v3940_v13, %v3480_v15  ;;  %v1089_v49 = vpop.f32.mrf.mxu2  ;;  %v3660_v13 = vld [vmem:[#allocation7 + $0x38] sm:$0xf]  ;;  %v3985_v15 = vld [vmem:[#allocation7 + $0x48] sm:$0xf0] }
 0x121   : > { %2247 = vmatpush.bf16.msra.mxu3 %v3515_v24  ;;  %v3677_v24 = vor.u32 %v3989_v12, %v3676_v11 }
 0x122   : > { %2293 = vmatpush.bf16.msra.mxu2 %v3651_v45  ;;  %v3464_v45 = vld [vmem:[#allocation7 + $0x44] sm:$0xf0] }
 0x123   : > { %2262 = vmatpush.bf16.msra.mxu0 %v3563_v28  ;;  %v3472_v28 = vld [vmem:[#allocation7 + $0x6c] sm:$0xf0]  ;;  %v1076_v60 = vpop.f32.mrf.mxu3 }
 0x124   : > { %2275 = vmatpush.bf16.msra.mxu1 %v3627_v44  ;;  %v3936_v44 = vld [vmem:[#allocation7 + $0x34] sm:$0xf] }
 0x125   : > { %2248 = vmatpush.bf16.msra.mxu3 %v3507_v40  ;;  %v3475_v40 = vor.u32 %v3938_v31, %v3472_v28  ;;  %v3656_v31 = vld [vmem:[#allocation7 + $0x10] sm:$0xf]  ;;  %v3984_v28 = vld [vmem:[#allocation7 + $0x20] sm:$0xf0] }
 0x126   : > { %2510 = vmatpush.bf16.msrb.mxu2 %v3685_v50  ;;  %v3966_v50 = vld [vmem:[#allocation7 + $0x28c] sm:$0xf]  ;;  %v1115_v0 = vpop.f32.mrf.mxu1  ;;  %v3657_v37 = vor.u32 %v3984_v28, %v3656_v31 }
 0x127   : > { %2263 = vmatpush.bf16.msra.mxu0 %v3555_v48  ;;  %v2455_v48 = vunpack.c.l.b16 %v2353_v43  ;;  %v3587_v6 = vor.u32 %v3966_v50, %v3584_v51  ;;  %v3704_v43 = vld [vmem:[#allocation7 + $0x1f0] sm:$0xf]  ;;  %v3700_v50 = vld [vmem:[#allocation7 + $0x1c8] sm:$0xf]  ;;  %v3995_v51 = vld [vmem:[#allocation7 + $0x1d8] sm:$0xf0] }
 0x128   : > { %2276 = vmatpush.bf16.msra.mxu1 %v3619_v3  ;;  %3652 = vmatmul.msk.bf16.vlgmr.msrb.gmra.mxu3 %vm625_vm1, %v4514_v14  ;;  %v4006_v3 = vld [vmem:[#allocation7 + $0x390] sm:$0xf0]  ;;  %v3701_v60 = vor.u32 %v3995_v51, %v3700_v50  ;;  %v3696_v0 = vld [vmem:[#allocation7 + $0x1a0] sm:$0xf] }
 0x129   : > { %2249 = vmatpush.bf16.msra.mxu3 %v3499_v57  ;;  %v2481_v56 = vpack.c.b16 %v2455_v48, %v2455_v48  ;;  %v3467_v57 = vor.u32 %v3936_v44, %v3464_v45  ;;  %v3745_v12 = vor.u32 %v4006_v3, %v3744_v1  ;;  %v3996_v44 = vld [vmem:[#allocation7 + $0x200] sm:$0xf0]  ;;  %v4002_v48 = vld [vmem:[#allocation7 + $0x2f0] sm:$0xf0] }
 0x12a   : > { %2511 = vmatpush.bf16.msrb.mxu2 %v3681_v9  ;;  %v3999_v9 = vld [vmem:[#allocation7 + $0x278] sm:$0xf0]  ;;  %v3994_v1 = vld [vmem:[#allocation7 + $0x1b0] sm:$0xf0] }
 0x12b   : > { %2264 = vmatpush.bf16.msra.mxu0 %v3547_v4  ;;  %v3934_v4 = vld [vmem:[#allocation7 + $0xc] sm:$0xf]  ;;  %v2508_v11 = vand.u32 %v2481_v56, %v4455_v17  ;;  %v3661_v17 = vor.u32 %v3985_v15, %v3660_v13  ;;  %v3688_v13 = vld [vmem:[#allocation7 + $0x150] sm:$0xf]  ;;  %v3992_v15 = vld [vmem:[#allocation7 + $0x160] sm:$0xf0] }
 0x12c   : > { %2277 = vmatpush.bf16.msra.mxu1 %v3611_v16  ;;  %v4571_v16 = vpop.f32.mrf.mxu0  ;;  %v4001_v56 = vld [vmem:[#allocation7 + $0x2c8] sm:$0xf0] }
 0x12d   : > { %2250 = vmatpush.bf16.msra.mxu3 %v3491_v2  ;;  %3653 = vmatmul.msk.bf16.vlgmr.msra.gmra.mxu2 %vm625_vm1, %v4514_v14  ;;  %v3740_v2 = vld [vmem:[#allocation7 + $0x358] sm:$0xf]  ;;  %v3725_v3 = vor.u32 %v4001_v56, %v3724_v58 }
 0x12e   : > { %2512 = vmatpush.bf16.msrb.mxu2 %v3677_v24  ;;  %v3717_v24 = vor.u32 %v3999_v9, %v3716_v7  ;;  %v3993_v7 = vld [vmem:[#allocation7 + $0x188] sm:$0xf0] }
 0x12f   : > { %2265 = vmatpush.bf16.msra.mxu0 %v3539_v18  ;;  %v3459_v18 = vor.u32 %v3934_v4, %v3456_v5  ;;  %v3720_v4 = vld [vmem:[#allocation7 + $0x290] sm:$0xf]  ;;  %v4000_v5 = vld [vmem:[#allocation7 + $0x2a0] sm:$0xf0] }
 0x130   : > { %2278 = vmatpush.bf16.msra.mxu1 %v3603_v8  ;;  %v3736_v8 = vld [vmem:[#allocation7 + $0x330] sm:$0xf] }
 0x131   : > { %2251 = vmatpush.bf16.msra.mxu3 %v3483_v32  ;;  %v3741_v32 = vor.u32 %v4005_v21, %v3740_v2 }
 0x132   : > { %2513 = vmatpush.bf16.msrb.mxu2 %v3673_v59  ;;  %v1139_v59 = vpop.f32.mrf.mxu1 }
 0x133   : > { %2266 = vmatpush.bf16.msra.mxu0 %v3531_v33  ;;  %v4004_v33 = vld [vmem:[#allocation7 + $0x340] sm:$0xf0] }
 0x134   : > { %2279 = vmatpush.bf16.msra.mxu1 %v3595_v46  ;;  %v3737_v38 = vor.u32 %v4004_v33, %v3736_v8  ;;  %v1102_v39 = vpop.f32.mrf.mxu0  ;;  %v3728_v46 = vld [vmem:[#allocation7 + $0x2e0] sm:$0xf] }
 0x135   : > { %2252 = vmatpush.bf16.msra.mxu3 %v3475_v40  ;;  %v3732_v40 = vld [vmem:[#allocation7 + $0x308] sm:$0xf] }
 0x136   : > { %2514 = vmatpush.bf16.msrb.mxu2 %v3669_v54  ;;  %v3733_v45 = vor.u32 %v4003_v41, %v3732_v40 }
 0x137   : > { %2267 = vmatpush.bf16.msra.mxu0 %v3523_v63  ;;  %v3705_v63 = vor.u32 %v3996_v44, %v3704_v43 }
 0x138   : > { %2280 = vmatpush.bf16.msra.mxu1 %v3587_v6  ;;  %v1152_v49 = vpop.f32.mrf.mxu2  ;;  %v3692_v6 = vld [vmem:[#allocation7 + $0x178] sm:$0xf] }
 0x139   : > { %2253 = vmatpush.bf16.msra.mxu3 %v3467_v57 }
 0x13a   : > { %2268 = vmatmul.bf16.vlgmr.msra.gmra.mxu0 %v4526_v20  ;;  %2515 = vmatpush.bf16.msrb.mxu2 %v3665_v10  ;;  %v1141_v54 = vpop.f32.mrf.mxu1  ;;  %v3721_v10 = vor.u32 %v4000_v5, %v3720_v4 }
 0x13b   : > { %2536 = vmatpush.bf16.msrb.mxu0 %v3749_v53  ;;  %2281 = vmatmul.bf16.vlgmr.msra.gmra.mxu1 %v4520_v61  ;;  %v3729_v53 = vor.u32 %v4002_v48, %v3728_v46  ;;  %v1126_v57 = vpop.f32.mrf.mxu3  ;;  %v1447_v46 = vld [vmem:[%s4659_s3] sm:$0x1] }
 0x13c   : > { %2555 = vmatpush.bf16.msrb.mxu1 %v2508_v11  ;;  %v1165_v55 = vpop.f32.mrf.mxu0  ;;  %v1140_v22 = vadd.f32 %v1139_v59, %v1126_v57 }
 0x13d   : > { %2254 = vmatpush.bf16.msra.mxu3 %v3459_v18  ;;  %v3689_v18 = vor.u32 %v3992_v15, %v3688_v13 }
 0x13e   : > { %2516 = vmatpush.bf16.msrb.mxu2 %v3661_v17 }
 0x13f   : > { %2537 = vmatpush.bf16.msrb.mxu0 %v3745_v12  ;;  %v3693_v12 = vor.u32 %v3993_v7, %v3692_v6 }
 0x140   : > { %2556 = vmatpush.bf16.msrb.mxu1 %v3753_v27  ;;  %2255 = vmatmul.bf16.vlgmr.msra.gmra.mxu3 %v4509_v47  ;;  %v1154_v9 = vpop.f32.mrf.mxu2 }
 0x141   : > { %2523 = vmatpush.bf16.msrb.mxu3 %v3717_v24  ;;  %v1153_v24 = vadd.f32 %v1152_v49, %v1140_v22 }
 0x142   : > { %2517 = vmatpush.bf16.msrb.mxu2 %v3657_v37 }
 0x143   : > { %2538 = vmatpush.bf16.msrb.mxu0 %v3741_v32  ;;  %v1128_v2 = vpop.f32.mrf.mxu3  ;;  %v1166_v27 = vadd.f32 %v1165_v55, %v1153_v24  ;;  %v1101_v32 = vadd.f32 %v4571_v16, %v1088_v25 }
 0x144   : > { %v1167_v11 = vpop.f32.mrf.mxu0 }
 0x145   : > { %2524 = vmatpush.bf16.msrb.mxu3 %v3713_v34  ;;  %2518 = vmatmul.bf16.vlgmr.msrb.gmra.mxu2 %v4509_v47  ;;  %v3697_v47 = vor.u32 %v3994_v1, %v3696_v0  ;;  %v1170_v8 = vrot.slane %v1166_v27, 1  ;;  %v1114_v33 = vadd.f32 %v4564_v30, %v1101_v32 }
 0x147   : > { %2539 = vmatpush.bf16.msrb.mxu0 %v3737_v38  ;;  %v1174_v35 = vsel %vm1172_vm4, %v1170_v8, 0.0  ;;  %v1169_v19 = vadd.f32 %v1114_v33, %v4558_v62 }
 0x148   : > { %v1431_v21 = vpop.f32.mrf.mxu2 }
 0x149   : > { %2525 = vmatpush.bf16.msrb.mxu3 %v3709_v42  ;;  %v1175_v59 = vadd.f32 %v1174_v35, %v1169_v19 }
 0x14b   : > { %2540 = vmatpush.bf16.msrb.mxu0 %v3733_v45  ;;  %3754 = vmatmul.msk.bf16.vlgmr.msrb.gmra.mxu1 %vm625_vm1, %v4514_v14 }
 0x14d   : > { %2526 = vmatpush.bf16.msrb.mxu3 %v3705_v63 }
 0x14f   : > { %2541 = vmatpush.bf16.msrb.mxu0 %v3729_v53  ;;  %v1405_v14 = vpop.f32.mrf.mxu0 }
 0x150   : > { %v1418_v23 = vpop.f32.mrf.mxu1  ;;  %v1433_v26 = vpop.f32.mrf.mxu2 }
 0x151   : > { %2527 = vmatpush.bf16.msrb.mxu3 %v3701_v60 }
 0x153   : > { %2542 = vmatpush.bf16.msrb.mxu0 %v3725_v3 }
 0x155   : > { %2528 = vmatpush.bf16.msrb.mxu3 %v3697_v47 }
 0x157   : > { %2543 = vmatpush.bf16.msrb.mxu0 %v3721_v10  ;;  %v1407_v17 = vpop.f32.mrf.mxu0 }
 0x158   : > { %v1420_v31 = vpop.f32.mrf.mxu1 }
 0x159   : > { %2529 = vmatpush.bf16.msrb.mxu3 %v3693_v12 }
 0x15a   : > { %2544 = vmatmul.bf16.vlgmr.msrb.gmra.mxu0 %v4520_v61 }
 0x15b   : > { %v1392_v28 = vpop.f32.mrf.mxu3 }
 0x15c   : > { %v1406_v61 = vadd.f32 %v1405_v14, %v1392_v28 }
 0x15d   : > { %2530 = vmatpush.bf16.msrb.mxu3 %v3689_v18 }
 0x15e   : > { %v1419_v34 = vadd.f32 %v1418_v23, %v1406_v61 }
 0x160   : > { %2531 = vmatmul.bf16.vlgmr.msrb.gmra.mxu3 %v4526_v20  ;;  %v1783_v20 = vpop.f32.mrf.mxu2  ;;  %v1432_v36 = vadd.f32 %v1431_v21, %v1419_v34  ;;  %v1822_v16 = vpop.f32.mrf.mxu1 }
 0x162   : > { %v1435_v29 = vrot.slane %v1432_v36, 2 }
 0x163   : > { %v1394_v37 = vpop.f32.mrf.mxu3 }
 0x164   : > { %v1439_v30 = vsel %vm1437_vm5, %v1435_v29, 0.0 }
 0x165   : > { %v1440_v38 = vadd.f32 %v1439_v30, %v1175_v59 }
 0x167   : > { %v1441_v39 = vrot.slane %v1440_v38, 4 }
 0x168   : > { %v1785_v40 = vpop.f32.mrf.mxu2  ;;  %v1824_v42 = vpop.f32.mrf.mxu1 }
 0x169   : > { %v1442_v41 = vmax.f32 %v1440_v38, %v1441_v39 }
 0x16b   : > { %v1443_v43 = vrot.slane %v1442_v41, 2 }
 0x16d   : > { %v1444_v45 = vmax.f32 %v1442_v41, %v1443_v43 }
 0x16f   : > { %v1809_v44 = vpop.f32.mrf.mxu0  ;;  %v1445_v62 = vrot.slane %v1444_v45, 1 }
 0x171   : > { %v1446_v48 = vmax.f32 %v1444_v45, %v1445_v62 }
 0x173   : > { %v1448_v63 = vadd.f32 %v1447_v46, %v1446_v48 }
 0x175   : > { %4079 = vtanh.f32 %v1448_v63 }
 0x177   : > { %v1811_v49 = vpop.f32.mrf.mxu0 }
 0x178   : > { %v1835_v50 = vpop.f32.mrf.mxu1 }
 0x17b   : > { %v1796_v51 = vpop.f32.mrf.mxu3  ;;  %v4080_v53 = vpop.eup %4079 }
 0x17c   : > { %v1797_v54 = vadd.f32 %v1796_v51, %v1783_v20  ;;  %1450 = vst [vmem:[%s301_s17] sm:$0x1] %v4080_v53 }
 0x17e   : > { %v1810_v55 = vadd.f32 %v1809_v44, %v1797_v54 }
 0x17f   : > { %v1874_v58 = vpop.f32.mrf.mxu0 }
 0x180   : > { %v1823_v56 = vadd.f32 %v1822_v16, %v1810_v55  ;;  %v1848_v57 = vpop.f32.mrf.mxu2  ;;  %v1837_v60 = vpop.f32.mrf.mxu1 }
 0x181   : > { %4200 = shalt.err (!%p4197_p10)
}
 0x182   : > { %4017 = dma.vmem_to_hbm [thread:$0]  (%p4379_p0), %s2591_s11, 16, %s2593_s24, %s2576_s22   ;;  %v1849_v0 = vadd.f32 %v1848_v57, %v1835_v50  ;;  %v1878_v11 = vrot.slane %v1823_v56, 6  ;;  %v2571_v55 = vld [vmem:[%s4659_s3] sm:$0x1] }
 0x183   : > { %v1798_v1 = vpop.f32.mrf.mxu3  ;;  %s2601_s30 = scalar_lea.hbm %s4661_s5, %s4339_s25  ;;  %s307_s9 = scalar_lea.vmem [#allocation9], %s4430_s2 }
 0x184   : > { %v1879_v18 = vsel %vm743_vm2, %v1878_v11, 0.0  ;;  %s2603_s8 = sshll.u32 %s307_s9, 4  ;;  %s2605_s14 = sshll.u32 %s2601_s30, 4  ;;  %s2604_s8 = int_to_ptr.vmem [resolvable:$true] %s2603_s8  ;;  %s2606_s14 = int_to_ptr.hbm [resolvable:$true] %s2605_s14 }
 0x185   : > { %s2580_s17 = scalar_lea.sflag [#allocation10], %s4430_s2  ;;  %s4215_s11 = sshra.s32 %s2606_s14, 4  ;;  %s4216_s11 = int_to_ptr.hbm [resolvable:$true] %s4215_s11 }
 0x186   : > { %s4217_s24 = scalar_lea.hbm %s4216_s11, 1  ;;  %s4221_s25 = scalar_lea.hbm %s4661_s5, 2 }
 0x187   : > { %v1876_v3 = vpop.f32.mrf.mxu0  ;;  %p4218_p12 = scmp.ne.s32.totalorder %s4216_s11, %s4217_s24  ;;  %p4222_p2 = scmp.lt.s32.totalorder %s4216_s11, %s4661_s5 }
 0x188   : > { %v1850_v4 = vpop.f32.mrf.mxu2  ;;  %p4223_p4 = scmp.lt.s32.totalorder %s4221_s25, %s4217_s24 }
 0x189   : > { %p4219_p5 = pnand %p4218_p12, %p4379_p0 }
 0x18a   : > { %p4224_p1 = por %p4223_p4, %p4222_p2 }
 0x18b   : > { %p4220_p11 = pneg %p4219_p5 }
 0x18d   : > { %p4225_p3 = pnand %p4224_p1, %p4220_p11 }
 0x197   : > { %v2204_v5 = vpop.f32.mrf.mxu0 }
 0x198   : > { %v2217_v47 = vpop.f32.mrf.mxu1 }
 0x199   : > { %v2218_v6 = vadd.f32 %v2217_v47, %v2204_v5 }
 0x19b   : > { %v1861_v7 = vpop.f32.mrf.mxu3 }
 0x19c   : > { %v1862_v9 = vadd.f32 %v1861_v7, %v1849_v0 }
 0x19e   : > { %v1875_v12 = vadd.f32 %v1874_v58, %v1862_v9 }
 0x19f   : > { %v2206_v10 = vpop.f32.mrf.mxu0 }
 0x1a0   : > { %v1880_v2 = vrot.slane %v1875_v12, 7  ;;  %v2230_v13 = vpop.f32.mrf.mxu2  ;;  %v2219_v15 = vpop.f32.mrf.mxu1 }
 0x1a1   : > { %v2231_v23 = vadd.f32 %v2230_v13, %v2218_v6 }
 0x1a2   : > { %v1881_v21 = vsel %vm748_vm3, %v1880_v2, 0.0 }
 0x1a3   : > { %v1863_v14 = vpop.f32.mrf.mxu3  ;;  %v1882_v22 = vadd.f32 %v1881_v21, %v1879_v18 }
 0x1a8   : > { %v2232_v24 = vpop.f32.mrf.mxu2 }
 0x1ab   : > { %v2243_v25 = vpop.f32.mrf.mxu3 }
 0x1ac   : > { %v2244_v26 = vadd.f32 %v2243_v25, %v2231_v23 }
 0x1ae   : > { %v2299_v17 = vadd.f32 %v2244_v26, %v1882_v22 }
 0x1b0   : > { %v2295_v32 = vpop.f32.mrf.mxu2 }
 0x1b3   : > { %v2245_v31 = vpop.f32.mrf.mxu3 }
 0x1b7   : > { %v2269_v27 = vpop.f32.mrf.mxu0 }
 0x1b8   : > { %v2282_v28 = vpop.f32.mrf.mxu1  ;;  %v2297_v8 = vpop.f32.mrf.mxu2 }
 0x1bf   : > { %v2271_v61 = vpop.f32.mrf.mxu0 }
 0x1c0   : > { %v2284_v33 = vpop.f32.mrf.mxu1 }
 0x1c3   : > { %v2256_v34 = vpop.f32.mrf.mxu3 }
 0x1c4   : > { %v2270_v59 = vadd.f32 %v2269_v27, %v2256_v34 }
 0x1c6   : > { %v2283_v37 = vadd.f32 %v2282_v28, %v2270_v59 }
 0x1c8   : > { %v2519_v20 = vpop.f32.mrf.mxu2  ;;  %v2558_v35 = vpop.f32.mrf.mxu1  ;;  %v2296_v38 = vadd.f32 %v2295_v32, %v2283_v37 }
 0x1ca   : > { %v2300_v40 = vrot.slane %v2296_v38, 1 }
 0x1cb   : > { %v2258_v36 = vpop.f32.mrf.mxu3 }
 0x1cc   : > { %v2301_v43 = vsel %vm1172_vm4, %v2300_v40, 0.0 }
 0x1cd   : > { %v2302_v62 = vadd.f32 %v2301_v43, %v2299_v17 }
 0x1d0   : > { %v2521_v19 = vpop.f32.mrf.mxu2  ;;  %v2560_v29 = vpop.f32.mrf.mxu1 }
 0x1d7   : > { %v2545_v16 = vpop.f32.mrf.mxu0 }
 0x1df   : > { %v2547_v30 = vpop.f32.mrf.mxu0 }
 0x1e3   : > { %v2532_v39 = vpop.f32.mrf.mxu3 }
 0x1e4   : > { %v2533_v41 = vadd.f32 %v2532_v39, %v2519_v20 }
 0x1e6   : > { %v2546_v42 = vadd.f32 %v2545_v16, %v2533_v41 }
 0x1e8   : > { %v2559_v44 = vadd.f32 %v2558_v35, %v2546_v42 }
 0x1ea   : > { %v2562_v45 = vrot.slane %v2559_v44, 2 }
 0x1eb   : > { %v2534_v46 = vpop.f32.mrf.mxu3 }
 0x1ec   : > { %v2563_v48 = vsel %vm1437_vm5, %v2562_v45, 0.0 }
 0x1ed   : > { %v2564_v63 = vadd.f32 %v2563_v48, %v2302_v62 }
 0x1ef   : > { %v2565_v49 = vrot.slane %v2564_v63, 4 }
 0x1f1   : > { %v2566_v50 = vmax.f32 %v2564_v63, %v2565_v49 }
 0x1f3   : > { %v2567_v51 = vrot.slane %v2566_v50, 2 }
 0x1f5   : > { %v2568_v54 = vmax.f32 %v2566_v50, %v2567_v51 }
 0x1f7   : > { %v2569_v53 = vrot.slane %v2568_v54, 1 }
 0x1f9   : > { %v2570_v58 = vmax.f32 %v2568_v54, %v2569_v53 }
 0x1fb   : > { %v2572_v56 = vadd.f32 %v2571_v55, %v2570_v58 }
 0x1fd   : > { %4081 = vtanh.f32 %v2572_v56 }
 0x203   : > { %v4082_v52 = vpop.eup %4081 }
 0x204   : > { %2574 = vst [vmem:[%s307_s9] sm:$0x1] %v4082_v52 }
 0x205   : > { %4228 = shalt.err (!%p4225_p3)
}
 0x206   : > { %4018 = dma.vmem_to_hbm [thread:$0]  (%p4379_p0), %s2604_s8, 16, %s2606_s14, %s2580_s17  }
 0x207 PF: > { %s2617_s2 = sand.u32 1, %s4267_s18   ;;  %p4676_p13 = scmp.ge.s32.totalorder %s4279_s21, 2 }
 0x208   : > { %s2618_s10 = scalar_lea.sflag [#allocation4], %s2617_s2 }
 0x209   : > { %p4033_p7 = pnand %p4676_p13, %p4385_p6 }
 0x20b   : > { %p4034_p9 = pneg %p4033_p7 }
 0x20d   : > { %4258 = dma.done.wait (%p4034_p9), %s2618_s10, 16  }
 0x20e   : > { %4260 = vsyncadd (%p4034_p9), %s2618_s10, 4294967280  ;;  %s2627_s16 = scalar_lea.sflag [#allocation10], %s2617_s2 }
 0x20f   : > { %4262 = dma.done.wait (%p4034_p9), %s2627_s16, 16  }
 0x210   : > { %4264 = vsyncadd (%p4034_p9), %s2627_s16, 4294967280  ;;  %s4677_s21 = sld [smem:[#allocation17_spill]]  ;;  %s4680_s18 = smov %s4271_s19 }
 0x211   : > { %s4678_s27 = sld [smem:[#allocation16_spill]] }
 0x212   : > { %s4679_s20 = sld [smem:[#allocation18_spill]] }
 0x216   : > { %p25_p0 = scmp.ge.s32.totalorder %s4677_s21, 4  }
 0x217   : > { %s4681_s19 = smov %s4678_s27 }
 0x218   :  { %27 = sbr.rel (!%p25_p0) target bundleno = 11 (0xb), region = 115 }
 0x21d   :  { %2632 = vsyncpa [#allocation3], 1 }
 0x21e   :  { %2634 = vsyncpa [#allocation3 + $0x1], 1 }
 0x21f   :  { %2635 = vsyncpa [#allocation6], 1 }
 0x220   :  { %2637 = vsyncpa [#allocation6 + $0x1], 1 }
 0x221   :  { %2638 = vsyncpa [#allocation4], 1 }
 0x222   :  { %2640 = vsyncpa [#allocation4 + $0x1], 1 }
 0x223   :  { %2641 = vsyncpa [#allocation10], 1 }
 0x224   :  { %2643 = vsyncpa [#allocation10 + $0x1], 1 }

</bundles_post_ra>
